<compile_context>
chip_gen: v7x
topology: tpu7x:2x2x1
jax: 0.10.0
libtpu: 0.0.40
codegen_flags: <defaults>
</compile_context>

<pallas_src>
import math

import jax
import jax.numpy as jnp
from jax.experimental import pallas as pl
from jax.experimental.pallas import tpu as pltpu

# ---------------- small synthetic BERT config ----------------
VOCAB = 100
HIDDEN = 32
HEADS = 4
HEAD_DIM = HIDDEN // HEADS
INTERMEDIATE = 64
LAYERS = 2
MAX_POS = 64
NUM_LABELS = 5          # num_labels of the token-classification head
LN_EPS = 1e-12          # BERT LayerNorm eps
PAD_LABELS = 128        # lane-dense classifier output width (sliced to 5 outside)

_INV_SQRT2 = 1.0 / math.sqrt(2.0)


# ---------------- in-kernel helpers ----------------
def _ln(x, g, b):
    """LayerNorm over the feature (lane) axis, f32 math, biased variance."""
    mu = jnp.mean(x, axis=-1, keepdims=True)
    xc = x - mu
    var = jnp.mean(xc * xc, axis=-1, keepdims=True)
    return xc * jax.lax.rsqrt(var + LN_EPS) * g + b


def _mm(a_f32, w_bf16):
    """MXU matmul: bf16 inputs, f32 accumulation."""
    return jnp.dot(a_f32.astype(jnp.bfloat16), w_bf16,
                   preferred_element_type=jnp.float32)


def _gelu(x):
    """Exact (erf) GELU, as in HF BERT, in f32."""
    return 0.5 * x * (1.0 + jax.lax.erf(x * _INV_SQRT2))


# ---------------- single fused kernel: embeddings-LN -> layers -> head ------
def _stack_kernel(
    emb_ref,            # (S, HIDDEN)  f32  summed embeddings for this batch
    mask_ref,           # (1, 1, S)    f32  additive attention bias (0 / -1e4)
    eg_ref, eb_ref,     # (1, HIDDEN)  f32  embedding LayerNorm gamma/beta
    wqkv_ref, bqkv_ref,  # (L, HIDDEN, 3H) bf16 / (L, 1, 3H) f32  (scale baked into Wq)
    wo_ref, bo_ref,      # (L, HIDDEN, HIDDEN) bf16 / (L, 1, HIDDEN) f32
    g1_ref, b1_ref,      # (L, 1, HIDDEN) f32
    wi_ref, bi_ref,      # (L, HIDDEN, INTER) bf16 / (L, 1, INTER) f32
    wo2_ref, bo2_ref,    # (L, INTER, HIDDEN) bf16 / (L, 1, HIDDEN) f32
    g2_ref, b2_ref,      # (L, 1, HIDDEN) f32
    wc_ref, bc_ref,      # (HIDDEN, PAD_LABELS) bf16 / (1, PAD_LABELS) f32
    out_ref,             # (S, PAD_LABELS) f32
):
    # --- embeddings LayerNorm ---
    h = _ln(emb_ref[...], eg_ref[...], eb_ref[...])          # (S, HIDDEN) f32
    bias = mask_ref[0]                                        # (1, S), broadcast over queries

    for l in range(LAYERS):                                   # static unrolled layer loop
        # --- fused QKV projection (one MXU push; 1/sqrt(Dh) folded into Wq) ---
        qkv = _mm(h, wqkv_ref[l]) + bqkv_ref[l]               # (S, 3*HIDDEN) f32

        # --- multi-head self-attention, all heads in this kernel ---
        ctx_heads = []
        for hd in range(HEADS):
            lo = hd * HEAD_DIM
            qh = qkv[:, lo:lo + HEAD_DIM].astype(jnp.bfloat16)                 # (S, Dh)
            kh = qkv[:, HIDDEN + lo:HIDDEN + lo + HEAD_DIM].astype(jnp.bfloat16)
            vh = qkv[:, 2 * HIDDEN + lo:2 * HIDDEN + lo + HEAD_DIM].astype(jnp.bfloat16)
            # scores = q @ k.T (contract on head_dim), f32 accumulate
            s = jax.lax.dot_general(qh, kh, (((1,), (1,)), ((), ())),
                                    preferred_element_type=jnp.float32)        # (S, S)
            s = s + bias
            s = s - jnp.max(s, axis=-1, keepdims=True)
            p = jnp.exp(s)
            p = p * pl.reciprocal(jnp.sum(p, axis=-1, keepdims=True), approx=True)
            ctx_heads.append(jnp.dot(p.astype(jnp.bfloat16), vh,
                                     preferred_element_type=jnp.float32))      # (S, Dh)
        ctx = jnp.concatenate(ctx_heads, axis=-1)             # (S, HIDDEN)

        # --- attention output projection + residual + LayerNorm ---
        attn_out = _mm(ctx, wo_ref[l]) + bo_ref[l]
        h = _ln(attn_out + h, g1_ref[l], b1_ref[l])

        # --- feed-forward (GELU) + residual + LayerNorm ---
        inter = _gelu(_mm(h, wi_ref[l]) + bi_ref[l])          # (S, INTERMEDIATE)
        ffn_out = _mm(inter, wo2_ref[l]) + bo2_ref[l]
        h = _ln(ffn_out + h, g2_ref[l], b2_ref[l])

    # --- token-classification head, lane-dense (padded to 128 labels) ---
    out_ref[...] = _mm(h, wc_ref[...]) + bc_ref[...]


# ---------------- parameter init (deterministic, synthetic) ----------------
def init_params(key):
    def nrm(key, shape, scale=0.02):
        return (scale * jax.random.normal(key, shape)).astype(jnp.float32)

    keys = iter(jax.random.split(key, 16 + LAYERS * 16))
    params = {
        "word_emb": nrm(next(keys), (VOCAB, HIDDEN)),
        "pos_emb": nrm(next(keys), (MAX_POS, HIDDEN)),
        "type_emb": nrm(next(keys), (2, HIDDEN)),
        "emb_ln_g": jnp.ones((HIDDEN,), jnp.float32),
        "emb_ln_b": jnp.zeros((HIDDEN,), jnp.float32),
        "wc": nrm(next(keys), (HIDDEN, NUM_LABELS)),
        "bc": jnp.zeros((NUM_LABELS,), jnp.float32),
        "layers": [],
    }
    for _ in range(LAYERS):
        lp = {
            "wq": nrm(next(keys), (HIDDEN, HIDDEN)),
            "bq": jnp.zeros((HIDDEN,), jnp.float32),
            "wk": nrm(next(keys), (HIDDEN, HIDDEN)),
            "bk": jnp.zeros((HIDDEN,), jnp.float32),
            "wv": nrm(next(keys), (HIDDEN, HIDDEN)),
            "bv": jnp.zeros((HIDDEN,), jnp.float32),
            "wo": nrm(next(keys), (HIDDEN, HIDDEN)),
            "bo": jnp.zeros((HIDDEN,), jnp.float32),
            "ln1_g": jnp.ones((HIDDEN,), jnp.float32),
            "ln1_b": jnp.zeros((HIDDEN,), jnp.float32),
            "wi": nrm(next(keys), (HIDDEN, INTERMEDIATE)),
            "bi": jnp.zeros((INTERMEDIATE,), jnp.float32),
            "wo2": nrm(next(keys), (INTERMEDIATE, HIDDEN)),
            "bo2": jnp.zeros((HIDDEN,), jnp.float32),
            "ln2_g": jnp.ones((HIDDEN,), jnp.float32),
            "ln2_b": jnp.zeros((HIDDEN,), jnp.float32),
        }
        params["layers"].append(lp)
    return params


# ---------------- one-time packing: stack layers, fuse QKV, bf16 weights ----
def pack_params(params):
    scale = 1.0 / math.sqrt(HEAD_DIM)
    wqkv, bqkv, wo, bo, g1, b1, wi, bi, wo2, bo2, g2, b2 = ([] for _ in range(12))
    for lp in params["layers"]:
        # fold the 1/sqrt(Dh) attention scale into Wq / bq
        wqkv.append(jnp.concatenate([lp["wq"] * scale, lp["wk"], lp["wv"]], axis=1))
        bqkv.append(jnp.concatenate([lp["bq"] * scale, lp["bk"], lp["bv"]]))
        wo.append(lp["wo"]); bo.append(lp["bo"])
        g1.append(lp["ln1_g"]); b1.append(lp["ln1_b"])
        wi.append(lp["wi"]); bi.append(lp["bi"])
        wo2.append(lp["wo2"]); bo2.append(lp["bo2"])
        g2.append(lp["ln2_g"]); b2.append(lp["ln2_b"])
    return {
        "word_emb": params["word_emb"],
        "pos_emb": params["pos_emb"],
        "type_emb": params["type_emb"],
        "emb_ln_g": params["emb_ln_g"].reshape(1, HIDDEN),
        "emb_ln_b": params["emb_ln_b"].reshape(1, HIDDEN),
        "wqkv": jnp.stack(wqkv).astype(jnp.bfloat16),                 # (L, H, 3H)
        "bqkv": jnp.stack(bqkv).reshape(LAYERS, 1, 3 * HIDDEN),
        "wo": jnp.stack(wo).astype(jnp.bfloat16),                     # (L, H, H)
        "bo": jnp.stack(bo).reshape(LAYERS, 1, HIDDEN),
        "ln1_g": jnp.stack(g1).reshape(LAYERS, 1, HIDDEN),
        "ln1_b": jnp.stack(b1).reshape(LAYERS, 1, HIDDEN),
        "wi": jnp.stack(wi).astype(jnp.bfloat16),                     # (L, H, I)
        "bi": jnp.stack(bi).reshape(LAYERS, 1, INTERMEDIATE),
        "wo2": jnp.stack(wo2).astype(jnp.bfloat16),                   # (L, I, H)
        "bo2": jnp.stack(bo2).reshape(LAYERS, 1, HIDDEN),
        "ln2_g": jnp.stack(g2).reshape(LAYERS, 1, HIDDEN),
        "ln2_b": jnp.stack(b2).reshape(LAYERS, 1, HIDDEN),
        # lane-dense classifier: pad 5 labels -> 128 columns
        "wc": jnp.pad(params["wc"], ((0, 0), (0, PAD_LABELS - NUM_LABELS))
                      ).astype(jnp.bfloat16),
        "bc": jnp.pad(params["bc"], (0, PAD_LABELS - NUM_LABELS)).reshape(1, PAD_LABELS),
    }


# ---------------- forward (== Transformer.forward -> outputs.logits) -------
def transformer_forward(packed, input_ids, attention_mask):
    B, S = input_ids.shape

    # --- embedding gather + sum (glue; LayerNorm happens inside the kernel) ---
    # TODO(synk): the row gather could be moved in-kernel via scalar-prefetched
    # ids + per-row DMA; left as an XLA gather since it is a single fused op.
    we = jnp.take(packed["word_emb"], input_ids, axis=0)          # (B,S,H)
    pe = packed["pos_emb"][:S][None, :, :]                        # (1,S,H)
    te = packed["type_emb"][0][None, None, :]                     # token_type_ids=0
    emb = (we + pe + te).astype(jnp.float32).reshape(B * S, HIDDEN)

    # BERT-style additive attention mask
    mask_bias = ((1.0 - attention_mask.astype(jnp.float32)) * -10000.0
                 ).reshape(B, 1, S)

    const3 = lambda b: (0, 0, 0)
    const2 = lambda b: (0, 0)

    out = pl.pallas_call(
        _stack_kernel,
        out_shape=jax.ShapeDtypeStruct((B * S, PAD_LABELS), jnp.float32),
        grid=(B,),
        in_specs=[
            pl.BlockSpec((S, HIDDEN), lambda b: (b, 0)),                     # emb
            pl.BlockSpec((1, 1, S), lambda b: (b, 0, 0)),                    # mask bias
            pl.BlockSpec((1, HIDDEN), const2),                               # emb_ln_g
            pl.BlockSpec((1, HIDDEN), const2),                               # emb_ln_b
            pl.BlockSpec((LAYERS, HIDDEN, 3 * HIDDEN), const3),              # wqkv
            pl.BlockSpec((LAYERS, 1, 3 * HIDDEN), const3),                   # bqkv
            pl.BlockSpec((LAYERS, HIDDEN, HIDDEN), const3),                  # wo
            pl.BlockSpec((LAYERS, 1, HIDDEN), const3),                       # bo
            pl.BlockSpec((LAYERS, 1, HIDDEN), const3),                       # ln1_g
            pl.BlockSpec((LAYERS, 1, HIDDEN), const3),                       # ln1_b
            pl.BlockSpec((LAYERS, HIDDEN, INTERMEDIATE), const3),            # wi
            pl.BlockSpec((LAYERS, 1, INTERMEDIATE), const3),                 # bi
            pl.BlockSpec((LAYERS, INTERMEDIATE, HIDDEN), const3),            # wo2
            pl.BlockSpec((LAYERS, 1, HIDDEN), const3),                       # bo2
            pl.BlockSpec((LAYERS, 1, HIDDEN), const3),                       # ln2_g
            pl.BlockSpec((LAYERS, 1, HIDDEN), const3),                       # ln2_b
            pl.BlockSpec((HIDDEN, PAD_LABELS), const2),                      # wc
            pl.BlockSpec((1, PAD_LABELS), const2),                           # bc
        ],
        out_specs=pl.BlockSpec((S, PAD_LABELS), lambda b: (b, 0)),
        compiler_params=pltpu.CompilerParams(
            dimension_semantics=("parallel",)),
    )(emb, mask_bias,
      packed["emb_ln_g"], packed["emb_ln_b"],
      packed["wqkv"], packed["bqkv"],
      packed["wo"], packed["bo"],
      packed["ln1_g"], packed["ln1_b"],
      packed["wi"], packed["bi"],
      packed["wo2"], packed["bo2"],
      packed["ln2_g"], packed["ln2_b"],
      packed["wc"], packed["bc"])

    # slice padded lane-dense logits back to NUM_LABELS (glue)
    logits = out[:, :NUM_LABELS].reshape(B, S, NUM_LABELS)
    return logits
    # TODO(synk): training-side pieces (CrossEntropyLoss, SGD, LR scheduler,
    # fit/backward/predict) are optimizer machinery, not part of the forward kernel.


if __name__ == "__main__":
    B, S = 2, 8
    key = jax.random.PRNGKey(0)
    k_ids, _ = jax.random.split(key)

    params = init_params(jax.random.PRNGKey(42))
    packed = pack_params(params)

    input_ids = jax.random.randint(k_ids, (B, S), 0, VOCAB, dtype=jnp.int32)
    attention_mask = jnp.concatenate(
        [jnp.ones((B, S - 2), jnp.float32), jnp.zeros((B, 2), jnp.float32)], axis=1)

    fwd = jax.jit(transformer_forward)
    logits = fwd(packed, input_ids, attention_mask)
    jax.block_until_ready(logits)
    assert logits.shape == (B, S, NUM_LABELS)
    print("KERNEL_OK")
</pallas_src>

<mosaic_0001>
module attributes {stable_mosaic.version = 11 : i64} {
  func.func @_stack_kernel(%arg0: i32, %arg1: memref<8x32xf32, #tpu.memory_space<vmem>>, %arg2: memref<1x1x8xf32, #tpu.memory_space<vmem>>, %arg3: memref<1x32xf32, #tpu.memory_space<vmem>>, %arg4: memref<1x32xf32, #tpu.memory_space<vmem>>, %arg5: memref<2x32x96xbf16, #tpu.memory_space<vmem>>, %arg6: memref<2x1x96xf32, #tpu.memory_space<vmem>>, %arg7: memref<2x32x32xbf16, #tpu.memory_space<vmem>>, %arg8: memref<2x1x32xf32, #tpu.memory_space<vmem>>, %arg9: memref<2x1x32xf32, #tpu.memory_space<vmem>>, %arg10: memref<2x1x32xf32, #tpu.memory_space<vmem>>, %arg11: memref<2x32x64xbf16, #tpu.memory_space<vmem>>, %arg12: memref<2x1x64xf32, #tpu.memory_space<vmem>>, %arg13: memref<2x64x32xbf16, #tpu.memory_space<vmem>>, %arg14: memref<2x1x32xf32, #tpu.memory_space<vmem>>, %arg15: memref<2x1x32xf32, #tpu.memory_space<vmem>>, %arg16: memref<2x1x32xf32, #tpu.memory_space<vmem>>, %arg17: memref<32x128xbf16, #tpu.memory_space<vmem>>, %arg18: memref<1x128xf32, #tpu.memory_space<vmem>>, %arg19: memref<8x128xf32, #tpu.memory_space<vmem>>) attributes {dimension_semantics = [#tpu.dimension_semantics<parallel>], iteration_bounds = array<i64: 2>, scalar_prefetch = 0 : i64, scratch_operands = 0 : i64, tpu.core_type = #tpu.core_type<tc>, window_params = [{transform_indices = @transform_0, window_bounds = array<i64: 8, 32>}, {transform_indices = @transform_1, window_bounds = array<i64: 1, 1, 8>}, {pipeline_mode = #tpu.pipeline_mode<synchronous>, transform_indices = @transform_2, window_bounds = array<i64: 1, 32>}, {pipeline_mode = #tpu.pipeline_mode<synchronous>, transform_indices = @transform_3, window_bounds = array<i64: 1, 32>}, {pipeline_mode = #tpu.pipeline_mode<synchronous>, transform_indices = @transform_4, window_bounds = array<i64: 2, 32, 96>}, {pipeline_mode = #tpu.pipeline_mode<synchronous>, transform_indices = @transform_5, window_bounds = array<i64: 2, 1, 96>}, {pipeline_mode = #tpu.pipeline_mode<synchronous>, transform_indices = @transform_6, window_bounds = array<i64: 2, 32, 32>}, {pipeline_mode = #tpu.pipeline_mode<synchronous>, transform_indices = @transform_7, window_bounds = array<i64: 2, 1, 32>}, {pipeline_mode = #tpu.pipeline_mode<synchronous>, transform_indices = @transform_8, window_bounds = array<i64: 2, 1, 32>}, {pipeline_mode = #tpu.pipeline_mode<synchronous>, transform_indices = @transform_9, window_bounds = array<i64: 2, 1, 32>}, {pipeline_mode = #tpu.pipeline_mode<synchronous>, transform_indices = @transform_10, window_bounds = array<i64: 2, 32, 64>}, {pipeline_mode = #tpu.pipeline_mode<synchronous>, transform_indices = @transform_11, window_bounds = array<i64: 2, 1, 64>}, {pipeline_mode = #tpu.pipeline_mode<synchronous>, transform_indices = @transform_12, window_bounds = array<i64: 2, 64, 32>}, {pipeline_mode = #tpu.pipeline_mode<synchronous>, transform_indices = @transform_13, window_bounds = array<i64: 2, 1, 32>}, {pipeline_mode = #tpu.pipeline_mode<synchronous>, transform_indices = @transform_14, window_bounds = array<i64: 2, 1, 32>}, {pipeline_mode = #tpu.pipeline_mode<synchronous>, transform_indices = @transform_15, window_bounds = array<i64: 2, 1, 32>}, {pipeline_mode = #tpu.pipeline_mode<synchronous>, transform_indices = @transform_16, window_bounds = array<i64: 32, 128>}, {pipeline_mode = #tpu.pipeline_mode<synchronous>, transform_indices = @transform_17, window_bounds = array<i64: 1, 128>}, {transform_indices = @transform_18, window_bounds = array<i64: 8, 128>}]} {
    %c0 = arith.constant 0 : index
    %c0_0 = arith.constant 0 : index
    %0 = vector.load %arg1[%c0, %c0_0] : memref<8x32xf32, #tpu.memory_space<vmem>>, vector<8x32xf32>
    %c0_1 = arith.constant 0 : index
    %c0_2 = arith.constant 0 : index
    %1 = vector.load %arg3[%c0_1, %c0_2] : memref<1x32xf32, #tpu.memory_space<vmem>>, vector<1x32xf32>
    %c0_3 = arith.constant 0 : index
    %c0_4 = arith.constant 0 : index
    %2 = vector.load %arg4[%c0_3, %c0_4] : memref<1x32xf32, #tpu.memory_space<vmem>>, vector<1x32xf32>
    %cst = arith.constant dense<0.000000e+00> : vector<8xf32>
    %3 = vector.multi_reduction <add>, %0, %cst [1] : vector<8x32xf32> to vector<8xf32>
    %4 = vector.shape_cast %3 : vector<8xf32> to vector<8x1xf32>
    %cst_5 = arith.constant 3.200000e+01 : f32
    %5 = vector.broadcast %cst_5 : f32 to vector<8x1xf32>
    %6 = arith.divf %4, %5 : vector<8x1xf32>
    %7 = vector.broadcast %6 : vector<8x1xf32> to vector<8x32xf32>
    %8 = arith.subf %0, %7 : vector<8x32xf32>
    %9 = arith.mulf %8, %8 : vector<8x32xf32>
    %cst_6 = arith.constant dense<0.000000e+00> : vector<8xf32>
    %10 = vector.multi_reduction <add>, %9, %cst_6 [1] : vector<8x32xf32> to vector<8xf32>
    %11 = vector.shape_cast %10 : vector<8xf32> to vector<8x1xf32>
    %cst_7 = arith.constant 3.200000e+01 : f32
    %12 = vector.broadcast %cst_7 : f32 to vector<8x1xf32>
    %13 = arith.divf %11, %12 : vector<8x1xf32>
    %cst_8 = arith.constant 9.99999996E-13 : f32
    %14 = vector.broadcast %cst_8 : f32 to vector<8x1xf32>
    %15 = arith.addf %13, %14 : vector<8x1xf32>
    %16 = math.rsqrt %15 : vector<8x1xf32>
    %17 = vector.broadcast %16 : vector<8x1xf32> to vector<8x32xf32>
    %18 = arith.mulf %8, %17 : vector<8x32xf32>
    %19 = vector.broadcast %1 : vector<1x32xf32> to vector<8x32xf32>
    %20 = arith.mulf %18, %19 : vector<8x32xf32>
    %21 = vector.broadcast %2 : vector<1x32xf32> to vector<8x32xf32>
    %22 = arith.addf %20, %21 : vector<8x32xf32>
    %c0_9 = arith.constant 0 : index
    %c0_10 = arith.constant 0 : index
    %c0_11 = arith.constant 0 : index
    %23 = vector.load %arg2[%c0_9, %c0_10, %c0_11] : memref<1x1x8xf32, #tpu.memory_space<vmem>>, vector<1x1x8xf32>
    %24 = vector.shape_cast %23 : vector<1x1x8xf32> to vector<1x8xf32>
    %c0_12 = arith.constant 0 : index
    %c0_13 = arith.constant 0 : index
    %c0_14 = arith.constant 0 : index
    %25 = vector.load %arg5[%c0_12, %c0_13, %c0_14] : memref<2x32x96xbf16, #tpu.memory_space<vmem>>, vector<1x32x96xbf16>
    %26 = vector.shape_cast %25 : vector<1x32x96xbf16> to vector<32x96xbf16>
    %27 = arith.truncf %22 : vector<8x32xf32> to vector<8x32xbf16>
    %cst_15 = arith.constant dense<0.000000e+00> : vector<8x96xf32>
    %28 = tpu.matmul %27, %26, %cst_15 {dimension_numbers = #tpu.dot_dimension_numbers<[1], [0], [0], [1], [0, 0, 1, 1], [], []>} : vector<8x32xbf16>, vector<32x96xbf16>, vector<8x96xf32> -> vector<8x96xf32>
    %c0_16 = arith.constant 0 : index
    %c0_17 = arith.constant 0 : index
    %c0_18 = arith.constant 0 : index
    %29 = vector.load %arg6[%c0_16, %c0_17, %c0_18] : memref<2x1x96xf32, #tpu.memory_space<vmem>>, vector<1x1x96xf32>
    %30 = vector.shape_cast %29 : vector<1x1x96xf32> to vector<1x96xf32>
    %31 = vector.broadcast %30 : vector<1x96xf32> to vector<8x96xf32>
    %32 = arith.addf %28, %31 : vector<8x96xf32>
    %33 = vector.extract_strided_slice %32 {offsets = [0, 0], sizes = [8, 8], strides = [1, 1]} : vector<8x96xf32> to vector<8x8xf32>
    %34 = arith.truncf %33 : vector<8x8xf32> to vector<8x8xbf16>
    %35 = vector.extract_strided_slice %32 {offsets = [0, 32], sizes = [8, 8], strides = [1, 1]} : vector<8x96xf32> to vector<8x8xf32>
    %36 = arith.truncf %35 : vector<8x8xf32> to vector<8x8xbf16>
    %37 = vector.extract_strided_slice %32 {offsets = [0, 64], sizes = [8, 8], strides = [1, 1]} : vector<8x96xf32> to vector<8x8xf32>
    %38 = arith.truncf %37 : vector<8x8xf32> to vector<8x8xbf16>
    %cst_19 = arith.constant dense<0.000000e+00> : vector<8x8xf32>
    %39 = tpu.matmul %34, %36, %cst_19 {dimension_numbers = #tpu.dot_dimension_numbers<[1], [1], [0], [0], [0, 0, 1, 0], [], []>} : vector<8x8xbf16>, vector<8x8xbf16>, vector<8x8xf32> -> vector<8x8xf32>
    %40 = vector.broadcast %24 : vector<1x8xf32> to vector<8x8xf32>
    %41 = arith.addf %39, %40 : vector<8x8xf32>
    %cst_20 = arith.constant dense<0xFF800000> : vector<8xf32>
    %42 = vector.multi_reduction <maximumf>, %41, %cst_20 [1] : vector<8x8xf32> to vector<8xf32>
    %43 = vector.shape_cast %42 : vector<8xf32> to vector<8x1xf32>
    %44 = vector.broadcast %43 : vector<8x1xf32> to vector<8x8xf32>
    %45 = arith.subf %41, %44 : vector<8x8xf32>
    %46 = math.exp %45 : vector<8x8xf32>
    %cst_21 = arith.constant dense<0.000000e+00> : vector<8xf32>
    %47 = vector.multi_reduction <add>, %46, %cst_21 [1] : vector<8x8xf32> to vector<8xf32>
    %48 = vector.shape_cast %47 : vector<8xf32> to vector<8x1xf32>
    %49 = tpu.reciprocal %48 {approx = true} : vector<8x1xf32> -> vector<8x1xf32>
    %50 = vector.broadcast %49 : vector<8x1xf32> to vector<8x8xf32>
    %51 = arith.mulf %46, %50 : vector<8x8xf32>
    %52 = arith.truncf %51 : vector<8x8xf32> to vector<8x8xbf16>
    %cst_22 = arith.constant dense<0.000000e+00> : vector<8x8xf32>
    %53 = tpu.matmul %52, %38, %cst_22 {dimension_numbers = #tpu.dot_dimension_numbers<[1], [0], [0], [1], [0, 0, 1, 1], [], []>} : vector<8x8xbf16>, vector<8x8xbf16>, vector<8x8xf32> -> vector<8x8xf32>
    %54 = vector.extract_strided_slice %32 {offsets = [0, 8], sizes = [8, 8], strides = [1, 1]} : vector<8x96xf32> to vector<8x8xf32>
    %55 = arith.truncf %54 : vector<8x8xf32> to vector<8x8xbf16>
    %56 = vector.extract_strided_slice %32 {offsets = [0, 40], sizes = [8, 8], strides = [1, 1]} : vector<8x96xf32> to vector<8x8xf32>
    %57 = arith.truncf %56 : vector<8x8xf32> to vector<8x8xbf16>
    %58 = vector.extract_strided_slice %32 {offsets = [0, 72], sizes = [8, 8], strides = [1, 1]} : vector<8x96xf32> to vector<8x8xf32>
    %59 = arith.truncf %58 : vector<8x8xf32> to vector<8x8xbf16>
    %cst_23 = arith.constant dense<0.000000e+00> : vector<8x8xf32>
    %60 = tpu.matmul %55, %57, %cst_23 {dimension_numbers = #tpu.dot_dimension_numbers<[1], [1], [0], [0], [0, 0, 1, 0], [], []>} : vector<8x8xbf16>, vector<8x8xbf16>, vector<8x8xf32> -> vector<8x8xf32>
    %61 = vector.broadcast %24 : vector<1x8xf32> to vector<8x8xf32>
    %62 = arith.addf %60, %61 : vector<8x8xf32>
    %cst_24 = arith.constant dense<0xFF800000> : vector<8xf32>
    %63 = vector.multi_reduction <maximumf>, %62, %cst_24 [1] : vector<8x8xf32> to vector<8xf32>
    %64 = vector.shape_cast %63 : vector<8xf32> to vector<8x1xf32>
    %65 = vector.broadcast %64 : vector<8x1xf32> to vector<8x8xf32>
    %66 = arith.subf %62, %65 : vector<8x8xf32>
    %67 = math.exp %66 : vector<8x8xf32>
    %cst_25 = arith.constant dense<0.000000e+00> : vector<8xf32>
    %68 = vector.multi_reduction <add>, %67, %cst_25 [1] : vector<8x8xf32> to vector<8xf32>
    %69 = vector.shape_cast %68 : vector<8xf32> to vector<8x1xf32>
    %70 = tpu.reciprocal %69 {approx = true} : vector<8x1xf32> -> vector<8x1xf32>
    %71 = vector.broadcast %70 : vector<8x1xf32> to vector<8x8xf32>
    %72 = arith.mulf %67, %71 : vector<8x8xf32>
    %73 = arith.truncf %72 : vector<8x8xf32> to vector<8x8xbf16>
    %cst_26 = arith.constant dense<0.000000e+00> : vector<8x8xf32>
    %74 = tpu.matmul %73, %59, %cst_26 {dimension_numbers = #tpu.dot_dimension_numbers<[1], [0], [0], [1], [0, 0, 1, 1], [], []>} : vector<8x8xbf16>, vector<8x8xbf16>, vector<8x8xf32> -> vector<8x8xf32>
    %75 = vector.extract_strided_slice %32 {offsets = [0, 16], sizes = [8, 8], strides = [1, 1]} : vector<8x96xf32> to vector<8x8xf32>
    %76 = arith.truncf %75 : vector<8x8xf32> to vector<8x8xbf16>
    %77 = vector.extract_strided_slice %32 {offsets = [0, 48], sizes = [8, 8], strides = [1, 1]} : vector<8x96xf32> to vector<8x8xf32>
    %78 = arith.truncf %77 : vector<8x8xf32> to vector<8x8xbf16>
    %79 = vector.extract_strided_slice %32 {offsets = [0, 80], sizes = [8, 8], strides = [1, 1]} : vector<8x96xf32> to vector<8x8xf32>
    %80 = arith.truncf %79 : vector<8x8xf32> to vector<8x8xbf16>
    %cst_27 = arith.constant dense<0.000000e+00> : vector<8x8xf32>
    %81 = tpu.matmul %76, %78, %cst_27 {dimension_numbers = #tpu.dot_dimension_numbers<[1], [1], [0], [0], [0, 0, 1, 0], [], []>} : vector<8x8xbf16>, vector<8x8xbf16>, vector<8x8xf32> -> vector<8x8xf32>
    %82 = vector.broadcast %24 : vector<1x8xf32> to vector<8x8xf32>
    %83 = arith.addf %81, %82 : vector<8x8xf32>
    %cst_28 = arith.constant dense<0xFF800000> : vector<8xf32>
    %84 = vector.multi_reduction <maximumf>, %83, %cst_28 [1] : vector<8x8xf32> to vector<8xf32>
    %85 = vector.shape_cast %84 : vector<8xf32> to vector<8x1xf32>
    %86 = vector.broadcast %85 : vector<8x1xf32> to vector<8x8xf32>
    %87 = arith.subf %83, %86 : vector<8x8xf32>
    %88 = math.exp %87 : vector<8x8xf32>
    %cst_29 = arith.constant dense<0.000000e+00> : vector<8xf32>
    %89 = vector.multi_reduction <add>, %88, %cst_29 [1] : vector<8x8xf32> to vector<8xf32>
    %90 = vector.shape_cast %89 : vector<8xf32> to vector<8x1xf32>
    %91 = tpu.reciprocal %90 {approx = true} : vector<8x1xf32> -> vector<8x1xf32>
    %92 = vector.broadcast %91 : vector<8x1xf32> to vector<8x8xf32>
    %93 = arith.mulf %88, %92 : vector<8x8xf32>
    %94 = arith.truncf %93 : vector<8x8xf32> to vector<8x8xbf16>
    %cst_30 = arith.constant dense<0.000000e+00> : vector<8x8xf32>
    %95 = tpu.matmul %94, %80, %cst_30 {dimension_numbers = #tpu.dot_dimension_numbers<[1], [0], [0], [1], [0, 0, 1, 1], [], []>} : vector<8x8xbf16>, vector<8x8xbf16>, vector<8x8xf32> -> vector<8x8xf32>
    %96 = vector.extract_strided_slice %32 {offsets = [0, 24], sizes = [8, 8], strides = [1, 1]} : vector<8x96xf32> to vector<8x8xf32>
    %97 = arith.truncf %96 : vector<8x8xf32> to vector<8x8xbf16>
    %98 = vector.extract_strided_slice %32 {offsets = [0, 56], sizes = [8, 8], strides = [1, 1]} : vector<8x96xf32> to vector<8x8xf32>
    %99 = arith.truncf %98 : vector<8x8xf32> to vector<8x8xbf16>
    %100 = vector.extract_strided_slice %32 {offsets = [0, 88], sizes = [8, 8], strides = [1, 1]} : vector<8x96xf32> to vector<8x8xf32>
    %101 = arith.truncf %100 : vector<8x8xf32> to vector<8x8xbf16>
    %cst_31 = arith.constant dense<0.000000e+00> : vector<8x8xf32>
    %102 = tpu.matmul %97, %99, %cst_31 {dimension_numbers = #tpu.dot_dimension_numbers<[1], [1], [0], [0], [0, 0, 1, 0], [], []>} : vector<8x8xbf16>, vector<8x8xbf16>, vector<8x8xf32> -> vector<8x8xf32>
    %103 = vector.broadcast %24 : vector<1x8xf32> to vector<8x8xf32>
    %104 = arith.addf %102, %103 : vector<8x8xf32>
    %cst_32 = arith.constant dense<0xFF800000> : vector<8xf32>
    %105 = vector.multi_reduction <maximumf>, %104, %cst_32 [1] : vector<8x8xf32> to vector<8xf32>
    %106 = vector.shape_cast %105 : vector<8xf32> to vector<8x1xf32>
    %107 = vector.broadcast %106 : vector<8x1xf32> to vector<8x8xf32>
    %108 = arith.subf %104, %107 : vector<8x8xf32>
    %109 = math.exp %108 : vector<8x8xf32>
    %cst_33 = arith.constant dense<0.000000e+00> : vector<8xf32>
    %110 = vector.multi_reduction <add>, %109, %cst_33 [1] : vector<8x8xf32> to vector<8xf32>
    %111 = vector.shape_cast %110 : vector<8xf32> to vector<8x1xf32>
    %112 = tpu.reciprocal %111 {approx = true} : vector<8x1xf32> -> vector<8x1xf32>
    %113 = vector.broadcast %112 : vector<8x1xf32> to vector<8x8xf32>
    %114 = arith.mulf %109, %113 : vector<8x8xf32>
    %115 = arith.truncf %114 : vector<8x8xf32> to vector<8x8xbf16>
    %cst_34 = arith.constant dense<0.000000e+00> : vector<8x8xf32>
    %116 = tpu.matmul %115, %101, %cst_34 {dimension_numbers = #tpu.dot_dimension_numbers<[1], [0], [0], [1], [0, 0, 1, 1], [], []>} : vector<8x8xbf16>, vector<8x8xbf16>, vector<8x8xf32> -> vector<8x8xf32>
    %117 = tpu.concatenate %53, %74, %95, %116 in 1 : vector<8x8xf32>, vector<8x8xf32>, vector<8x8xf32>, vector<8x8xf32> -> vector<8x32xf32>
    %c0_35 = arith.constant 0 : index
    %c0_36 = arith.constant 0 : index
    %c0_37 = arith.constant 0 : index
    %118 = vector.load %arg7[%c0_35, %c0_36, %c0_37] : memref<2x32x32xbf16, #tpu.memory_space<vmem>>, vector<1x32x32xbf16>
    %119 = vector.shape_cast %118 : vector<1x32x32xbf16> to vector<32x32xbf16>
    %120 = arith.truncf %117 : vector<8x32xf32> to vector<8x32xbf16>
    %cst_38 = arith.constant dense<0.000000e+00> : vector<8x32xf32>
    %121 = tpu.matmul %120, %119, %cst_38 {dimension_numbers = #tpu.dot_dimension_numbers<[1], [0], [0], [1], [0, 0, 1, 1], [], []>} : vector<8x32xbf16>, vector<32x32xbf16>, vector<8x32xf32> -> vector<8x32xf32>
    %c0_39 = arith.constant 0 : index
    %c0_40 = arith.constant 0 : index
    %c0_41 = arith.constant 0 : index
    %122 = vector.load %arg8[%c0_39, %c0_40, %c0_41] : memref<2x1x32xf32, #tpu.memory_space<vmem>>, vector<1x1x32xf32>
    %123 = vector.shape_cast %122 : vector<1x1x32xf32> to vector<1x32xf32>
    %124 = vector.broadcast %123 : vector<1x32xf32> to vector<8x32xf32>
    %125 = arith.addf %121, %124 : vector<8x32xf32>
    %126 = arith.addf %125, %22 : vector<8x32xf32>
    %c0_42 = arith.constant 0 : index
    %c0_43 = arith.constant 0 : index
    %c0_44 = arith.constant 0 : index
    %127 = vector.load %arg9[%c0_42, %c0_43, %c0_44] : memref<2x1x32xf32, #tpu.memory_space<vmem>>, vector<1x1x32xf32>
    %128 = vector.shape_cast %127 : vector<1x1x32xf32> to vector<1x32xf32>
    %c0_45 = arith.constant 0 : index
    %c0_46 = arith.constant 0 : index
    %c0_47 = arith.constant 0 : index
    %129 = vector.load %arg10[%c0_45, %c0_46, %c0_47] : memref<2x1x32xf32, #tpu.memory_space<vmem>>, vector<1x1x32xf32>
    %130 = vector.shape_cast %129 : vector<1x1x32xf32> to vector<1x32xf32>
    %cst_48 = arith.constant dense<0.000000e+00> : vector<8xf32>
    %131 = vector.multi_reduction <add>, %126, %cst_48 [1] : vector<8x32xf32> to vector<8xf32>
    %132 = vector.shape_cast %131 : vector<8xf32> to vector<8x1xf32>
    %cst_49 = arith.constant 3.200000e+01 : f32
    %133 = vector.broadcast %cst_49 : f32 to vector<8x1xf32>
    %134 = arith.divf %132, %133 : vector<8x1xf32>
    %135 = vector.broadcast %134 : vector<8x1xf32> to vector<8x32xf32>
    %136 = arith.subf %126, %135 : vector<8x32xf32>
    %137 = arith.mulf %136, %136 : vector<8x32xf32>
    %cst_50 = arith.constant dense<0.000000e+00> : vector<8xf32>
    %138 = vector.multi_reduction <add>, %137, %cst_50 [1] : vector<8x32xf32> to vector<8xf32>
    %139 = vector.shape_cast %138 : vector<8xf32> to vector<8x1xf32>
    %cst_51 = arith.constant 3.200000e+01 : f32
    %140 = vector.broadcast %cst_51 : f32 to vector<8x1xf32>
    %141 = arith.divf %139, %140 : vector<8x1xf32>
    %cst_52 = arith.constant 9.99999996E-13 : f32
    %142 = vector.broadcast %cst_52 : f32 to vector<8x1xf32>
    %143 = arith.addf %141, %142 : vector<8x1xf32>
    %144 = math.rsqrt %143 : vector<8x1xf32>
    %145 = vector.broadcast %144 : vector<8x1xf32> to vector<8x32xf32>
    %146 = arith.mulf %136, %145 : vector<8x32xf32>
    %147 = vector.broadcast %128 : vector<1x32xf32> to vector<8x32xf32>
    %148 = arith.mulf %146, %147 : vector<8x32xf32>
    %149 = vector.broadcast %130 : vector<1x32xf32> to vector<8x32xf32>
    %150 = arith.addf %148, %149 : vector<8x32xf32>
    %c0_53 = arith.constant 0 : index
    %c0_54 = arith.constant 0 : index
    %c0_55 = arith.constant 0 : index
    %151 = vector.load %arg11[%c0_53, %c0_54, %c0_55] : memref<2x32x64xbf16, #tpu.memory_space<vmem>>, vector<1x32x64xbf16>
    %152 = vector.shape_cast %151 : vector<1x32x64xbf16> to vector<32x64xbf16>
    %153 = arith.truncf %150 : vector<8x32xf32> to vector<8x32xbf16>
    %cst_56 = arith.constant dense<0.000000e+00> : vector<8x64xf32>
    %154 = tpu.matmul %153, %152, %cst_56 {dimension_numbers = #tpu.dot_dimension_numbers<[1], [0], [0], [1], [0, 0, 1, 1], [], []>} : vector<8x32xbf16>, vector<32x64xbf16>, vector<8x64xf32> -> vector<8x64xf32>
    %c0_57 = arith.constant 0 : index
    %c0_58 = arith.constant 0 : index
    %c0_59 = arith.constant 0 : index
    %155 = vector.load %arg12[%c0_57, %c0_58, %c0_59] : memref<2x1x64xf32, #tpu.memory_space<vmem>>, vector<1x1x64xf32>
    %156 = vector.shape_cast %155 : vector<1x1x64xf32> to vector<1x64xf32>
    %157 = vector.broadcast %156 : vector<1x64xf32> to vector<8x64xf32>
    %158 = arith.addf %154, %157 : vector<8x64xf32>
    %cst_60 = arith.constant 5.000000e-01 : f32
    %159 = vector.broadcast %cst_60 : f32 to vector<8x64xf32>
    %160 = arith.mulf %159, %158 : vector<8x64xf32>
    %cst_61 = arith.constant 0.707106769 : f32
    %161 = vector.broadcast %cst_61 : f32 to vector<8x64xf32>
    %162 = arith.mulf %158, %161 : vector<8x64xf32>
    %163 = math.erf %162 : vector<8x64xf32>
    %cst_62 = arith.constant 1.000000e+00 : f32
    %164 = vector.broadcast %cst_62 : f32 to vector<8x64xf32>
    %165 = arith.addf %164, %163 : vector<8x64xf32>
    %166 = arith.mulf %160, %165 : vector<8x64xf32>
    %c0_63 = arith.constant 0 : index
    %c0_64 = arith.constant 0 : index
    %c0_65 = arith.constant 0 : index
    %167 = vector.load %arg13[%c0_63, %c0_64, %c0_65] : memref<2x64x32xbf16, #tpu.memory_space<vmem>>, vector<1x64x32xbf16>
    %168 = vector.shape_cast %167 : vector<1x64x32xbf16> to vector<64x32xbf16>
    %169 = arith.truncf %166 : vector<8x64xf32> to vector<8x64xbf16>
    %cst_66 = arith.constant dense<0.000000e+00> : vector<8x32xf32>
    %170 = tpu.matmul %169, %168, %cst_66 {dimension_numbers = #tpu.dot_dimension_numbers<[1], [0], [0], [1], [0, 0, 1, 1], [], []>} : vector<8x64xbf16>, vector<64x32xbf16>, vector<8x32xf32> -> vector<8x32xf32>
    %c0_67 = arith.constant 0 : index
    %c0_68 = arith.constant 0 : index
    %c0_69 = arith.constant 0 : index
    %171 = vector.load %arg14[%c0_67, %c0_68, %c0_69] : memref<2x1x32xf32, #tpu.memory_space<vmem>>, vector<1x1x32xf32>
    %172 = vector.shape_cast %171 : vector<1x1x32xf32> to vector<1x32xf32>
    %173 = vector.broadcast %172 : vector<1x32xf32> to vector<8x32xf32>
    %174 = arith.addf %170, %173 : vector<8x32xf32>
    %175 = arith.addf %174, %150 : vector<8x32xf32>
    %c0_70 = arith.constant 0 : index
    %c0_71 = arith.constant 0 : index
    %c0_72 = arith.constant 0 : index
    %176 = vector.load %arg15[%c0_70, %c0_71, %c0_72] : memref<2x1x32xf32, #tpu.memory_space<vmem>>, vector<1x1x32xf32>
    %177 = vector.shape_cast %176 : vector<1x1x32xf32> to vector<1x32xf32>
    %c0_73 = arith.constant 0 : index
    %c0_74 = arith.constant 0 : index
    %c0_75 = arith.constant 0 : index
    %178 = vector.load %arg16[%c0_73, %c0_74, %c0_75] : memref<2x1x32xf32, #tpu.memory_space<vmem>>, vector<1x1x32xf32>
    %179 = vector.shape_cast %178 : vector<1x1x32xf32> to vector<1x32xf32>
    %cst_76 = arith.constant dense<0.000000e+00> : vector<8xf32>
    %180 = vector.multi_reduction <add>, %175, %cst_76 [1] : vector<8x32xf32> to vector<8xf32>
    %181 = vector.shape_cast %180 : vector<8xf32> to vector<8x1xf32>
    %cst_77 = arith.constant 3.200000e+01 : f32
    %182 = vector.broadcast %cst_77 : f32 to vector<8x1xf32>
    %183 = arith.divf %181, %182 : vector<8x1xf32>
    %184 = vector.broadcast %183 : vector<8x1xf32> to vector<8x32xf32>
    %185 = arith.subf %175, %184 : vector<8x32xf32>
    %186 = arith.mulf %185, %185 : vector<8x32xf32>
    %cst_78 = arith.constant dense<0.000000e+00> : vector<8xf32>
    %187 = vector.multi_reduction <add>, %186, %cst_78 [1] : vector<8x32xf32> to vector<8xf32>
    %188 = vector.shape_cast %187 : vector<8xf32> to vector<8x1xf32>
    %cst_79 = arith.constant 3.200000e+01 : f32
    %189 = vector.broadcast %cst_79 : f32 to vector<8x1xf32>
    %190 = arith.divf %188, %189 : vector<8x1xf32>
    %cst_80 = arith.constant 9.99999996E-13 : f32
    %191 = vector.broadcast %cst_80 : f32 to vector<8x1xf32>
    %192 = arith.addf %190, %191 : vector<8x1xf32>
    %193 = math.rsqrt %192 : vector<8x1xf32>
    %194 = vector.broadcast %193 : vector<8x1xf32> to vector<8x32xf32>
    %195 = arith.mulf %185, %194 : vector<8x32xf32>
    %196 = vector.broadcast %177 : vector<1x32xf32> to vector<8x32xf32>
    %197 = arith.mulf %195, %196 : vector<8x32xf32>
    %198 = vector.broadcast %179 : vector<1x32xf32> to vector<8x32xf32>
    %199 = arith.addf %197, %198 : vector<8x32xf32>
    %c1 = arith.constant 1 : index
    %c0_81 = arith.constant 0 : index
    %c0_82 = arith.constant 0 : index
    %200 = vector.load %arg5[%c1, %c0_81, %c0_82] : memref<2x32x96xbf16, #tpu.memory_space<vmem>>, vector<1x32x96xbf16>
    %201 = vector.shape_cast %200 : vector<1x32x96xbf16> to vector<32x96xbf16>
    %202 = arith.truncf %199 : vector<8x32xf32> to vector<8x32xbf16>
    %cst_83 = arith.constant dense<0.000000e+00> : vector<8x96xf32>
    %203 = tpu.matmul %202, %201, %cst_83 {dimension_numbers = #tpu.dot_dimension_numbers<[1], [0], [0], [1], [0, 0, 1, 1], [], []>} : vector<8x32xbf16>, vector<32x96xbf16>, vector<8x96xf32> -> vector<8x96xf32>
    %c1_84 = arith.constant 1 : index
    %c0_85 = arith.constant 0 : index
    %c0_86 = arith.constant 0 : index
    %204 = vector.load %arg6[%c1_84, %c0_85, %c0_86] : memref<2x1x96xf32, #tpu.memory_space<vmem>>, vector<1x1x96xf32>
    %205 = vector.shape_cast %204 : vector<1x1x96xf32> to vector<1x96xf32>
    %206 = vector.broadcast %205 : vector<1x96xf32> to vector<8x96xf32>
    %207 = arith.addf %203, %206 : vector<8x96xf32>
    %208 = vector.extract_strided_slice %207 {offsets = [0, 0], sizes = [8, 8], strides = [1, 1]} : vector<8x96xf32> to vector<8x8xf32>
    %209 = arith.truncf %208 : vector<8x8xf32> to vector<8x8xbf16>
    %210 = vector.extract_strided_slice %207 {offsets = [0, 32], sizes = [8, 8], strides = [1, 1]} : vector<8x96xf32> to vector<8x8xf32>
    %211 = arith.truncf %210 : vector<8x8xf32> to vector<8x8xbf16>
    %212 = vector.extract_strided_slice %207 {offsets = [0, 64], sizes = [8, 8], strides = [1, 1]} : vector<8x96xf32> to vector<8x8xf32>
    %213 = arith.truncf %212 : vector<8x8xf32> to vector<8x8xbf16>
    %cst_87 = arith.constant dense<0.000000e+00> : vector<8x8xf32>
    %214 = tpu.matmul %209, %211, %cst_87 {dimension_numbers = #tpu.dot_dimension_numbers<[1], [1], [0], [0], [0, 0, 1, 0], [], []>} : vector<8x8xbf16>, vector<8x8xbf16>, vector<8x8xf32> -> vector<8x8xf32>
    %215 = vector.broadcast %24 : vector<1x8xf32> to vector<8x8xf32>
    %216 = arith.addf %214, %215 : vector<8x8xf32>
    %cst_88 = arith.constant dense<0xFF800000> : vector<8xf32>
    %217 = vector.multi_reduction <maximumf>, %216, %cst_88 [1] : vector<8x8xf32> to vector<8xf32>
    %218 = vector.shape_cast %217 : vector<8xf32> to vector<8x1xf32>
    %219 = vector.broadcast %218 : vector<8x1xf32> to vector<8x8xf32>
    %220 = arith.subf %216, %219 : vector<8x8xf32>
    %221 = math.exp %220 : vector<8x8xf32>
    %cst_89 = arith.constant dense<0.000000e+00> : vector<8xf32>
    %222 = vector.multi_reduction <add>, %221, %cst_89 [1] : vector<8x8xf32> to vector<8xf32>
    %223 = vector.shape_cast %222 : vector<8xf32> to vector<8x1xf32>
    %224 = tpu.reciprocal %223 {approx = true} : vector<8x1xf32> -> vector<8x1xf32>
    %225 = vector.broadcast %224 : vector<8x1xf32> to vector<8x8xf32>
    %226 = arith.mulf %221, %225 : vector<8x8xf32>
    %227 = arith.truncf %226 : vector<8x8xf32> to vector<8x8xbf16>
    %cst_90 = arith.constant dense<0.000000e+00> : vector<8x8xf32>
    %228 = tpu.matmul %227, %213, %cst_90 {dimension_numbers = #tpu.dot_dimension_numbers<[1], [0], [0], [1], [0, 0, 1, 1], [], []>} : vector<8x8xbf16>, vector<8x8xbf16>, vector<8x8xf32> -> vector<8x8xf32>
    %229 = vector.extract_strided_slice %207 {offsets = [0, 8], sizes = [8, 8], strides = [1, 1]} : vector<8x96xf32> to vector<8x8xf32>
    %230 = arith.truncf %229 : vector<8x8xf32> to vector<8x8xbf16>
    %231 = vector.extract_strided_slice %207 {offsets = [0, 40], sizes = [8, 8], strides = [1, 1]} : vector<8x96xf32> to vector<8x8xf32>
    %232 = arith.truncf %231 : vector<8x8xf32> to vector<8x8xbf16>
    %233 = vector.extract_strided_slice %207 {offsets = [0, 72], sizes = [8, 8], strides = [1, 1]} : vector<8x96xf32> to vector<8x8xf32>
    %234 = arith.truncf %233 : vector<8x8xf32> to vector<8x8xbf16>
    %cst_91 = arith.constant dense<0.000000e+00> : vector<8x8xf32>
    %235 = tpu.matmul %230, %232, %cst_91 {dimension_numbers = #tpu.dot_dimension_numbers<[1], [1], [0], [0], [0, 0, 1, 0], [], []>} : vector<8x8xbf16>, vector<8x8xbf16>, vector<8x8xf32> -> vector<8x8xf32>
    %236 = vector.broadcast %24 : vector<1x8xf32> to vector<8x8xf32>
    %237 = arith.addf %235, %236 : vector<8x8xf32>
    %cst_92 = arith.constant dense<0xFF800000> : vector<8xf32>
    %238 = vector.multi_reduction <maximumf>, %237, %cst_92 [1] : vector<8x8xf32> to vector<8xf32>
    %239 = vector.shape_cast %238 : vector<8xf32> to vector<8x1xf32>
    %240 = vector.broadcast %239 : vector<8x1xf32> to vector<8x8xf32>
    %241 = arith.subf %237, %240 : vector<8x8xf32>
    %242 = math.exp %241 : vector<8x8xf32>
    %cst_93 = arith.constant dense<0.000000e+00> : vector<8xf32>
    %243 = vector.multi_reduction <add>, %242, %cst_93 [1] : vector<8x8xf32> to vector<8xf32>
    %244 = vector.shape_cast %243 : vector<8xf32> to vector<8x1xf32>
    %245 = tpu.reciprocal %244 {approx = true} : vector<8x1xf32> -> vector<8x1xf32>
    %246 = vector.broadcast %245 : vector<8x1xf32> to vector<8x8xf32>
    %247 = arith.mulf %242, %246 : vector<8x8xf32>
    %248 = arith.truncf %247 : vector<8x8xf32> to vector<8x8xbf16>
    %cst_94 = arith.constant dense<0.000000e+00> : vector<8x8xf32>
    %249 = tpu.matmul %248, %234, %cst_94 {dimension_numbers = #tpu.dot_dimension_numbers<[1], [0], [0], [1], [0, 0, 1, 1], [], []>} : vector<8x8xbf16>, vector<8x8xbf16>, vector<8x8xf32> -> vector<8x8xf32>
    %250 = vector.extract_strided_slice %207 {offsets = [0, 16], sizes = [8, 8], strides = [1, 1]} : vector<8x96xf32> to vector<8x8xf32>
    %251 = arith.truncf %250 : vector<8x8xf32> to vector<8x8xbf16>
    %252 = vector.extract_strided_slice %207 {offsets = [0, 48], sizes = [8, 8], strides = [1, 1]} : vector<8x96xf32> to vector<8x8xf32>
    %253 = arith.truncf %252 : vector<8x8xf32> to vector<8x8xbf16>
    %254 = vector.extract_strided_slice %207 {offsets = [0, 80], sizes = [8, 8], strides = [1, 1]} : vector<8x96xf32> to vector<8x8xf32>
    %255 = arith.truncf %254 : vector<8x8xf32> to vector<8x8xbf16>
    %cst_95 = arith.constant dense<0.000000e+00> : vector<8x8xf32>
    %256 = tpu.matmul %251, %253, %cst_95 {dimension_numbers = #tpu.dot_dimension_numbers<[1], [1], [0], [0], [0, 0, 1, 0], [], []>} : vector<8x8xbf16>, vector<8x8xbf16>, vector<8x8xf32> -> vector<8x8xf32>
    %257 = vector.broadcast %24 : vector<1x8xf32> to vector<8x8xf32>
    %258 = arith.addf %256, %257 : vector<8x8xf32>
    %cst_96 = arith.constant dense<0xFF800000> : vector<8xf32>
    %259 = vector.multi_reduction <maximumf>, %258, %cst_96 [1] : vector<8x8xf32> to vector<8xf32>
    %260 = vector.shape_cast %259 : vector<8xf32> to vector<8x1xf32>
    %261 = vector.broadcast %260 : vector<8x1xf32> to vector<8x8xf32>
    %262 = arith.subf %258, %261 : vector<8x8xf32>
    %263 = math.exp %262 : vector<8x8xf32>
    %cst_97 = arith.constant dense<0.000000e+00> : vector<8xf32>
    %264 = vector.multi_reduction <add>, %263, %cst_97 [1] : vector<8x8xf32> to vector<8xf32>
    %265 = vector.shape_cast %264 : vector<8xf32> to vector<8x1xf32>
    %266 = tpu.reciprocal %265 {approx = true} : vector<8x1xf32> -> vector<8x1xf32>
    %267 = vector.broadcast %266 : vector<8x1xf32> to vector<8x8xf32>
    %268 = arith.mulf %263, %267 : vector<8x8xf32>
    %269 = arith.truncf %268 : vector<8x8xf32> to vector<8x8xbf16>
    %cst_98 = arith.constant dense<0.000000e+00> : vector<8x8xf32>
    %270 = tpu.matmul %269, %255, %cst_98 {dimension_numbers = #tpu.dot_dimension_numbers<[1], [0], [0], [1], [0, 0, 1, 1], [], []>} : vector<8x8xbf16>, vector<8x8xbf16>, vector<8x8xf32> -> vector<8x8xf32>
    %271 = vector.extract_strided_slice %207 {offsets = [0, 24], sizes = [8, 8], strides = [1, 1]} : vector<8x96xf32> to vector<8x8xf32>
    %272 = arith.truncf %271 : vector<8x8xf32> to vector<8x8xbf16>
    %273 = vector.extract_strided_slice %207 {offsets = [0, 56], sizes = [8, 8], strides = [1, 1]} : vector<8x96xf32> to vector<8x8xf32>
    %274 = arith.truncf %273 : vector<8x8xf32> to vector<8x8xbf16>
    %275 = vector.extract_strided_slice %207 {offsets = [0, 88], sizes = [8, 8], strides = [1, 1]} : vector<8x96xf32> to vector<8x8xf32>
    %276 = arith.truncf %275 : vector<8x8xf32> to vector<8x8xbf16>
    %cst_99 = arith.constant dense<0.000000e+00> : vector<8x8xf32>
    %277 = tpu.matmul %272, %274, %cst_99 {dimension_numbers = #tpu.dot_dimension_numbers<[1], [1], [0], [0], [0, 0, 1, 0], [], []>} : vector<8x8xbf16>, vector<8x8xbf16>, vector<8x8xf32> -> vector<8x8xf32>
    %278 = vector.broadcast %24 : vector<1x8xf32> to vector<8x8xf32>
    %279 = arith.addf %277, %278 : vector<8x8xf32>
    %cst_100 = arith.constant dense<0xFF800000> : vector<8xf32>
    %280 = vector.multi_reduction <maximumf>, %279, %cst_100 [1] : vector<8x8xf32> to vector<8xf32>
    %281 = vector.shape_cast %280 : vector<8xf32> to vector<8x1xf32>
    %282 = vector.broadcast %281 : vector<8x1xf32> to vector<8x8xf32>
    %283 = arith.subf %279, %282 : vector<8x8xf32>
    %284 = math.exp %283 : vector<8x8xf32>
    %cst_101 = arith.constant dense<0.000000e+00> : vector<8xf32>
    %285 = vector.multi_reduction <add>, %284, %cst_101 [1] : vector<8x8xf32> to vector<8xf32>
    %286 = vector.shape_cast %285 : vector<8xf32> to vector<8x1xf32>
    %287 = tpu.reciprocal %286 {approx = true} : vector<8x1xf32> -> vector<8x1xf32>
    %288 = vector.broadcast %287 : vector<8x1xf32> to vector<8x8xf32>
    %289 = arith.mulf %284, %288 : vector<8x8xf32>
    %290 = arith.truncf %289 : vector<8x8xf32> to vector<8x8xbf16>
    %cst_102 = arith.constant dense<0.000000e+00> : vector<8x8xf32>
    %291 = tpu.matmul %290, %276, %cst_102 {dimension_numbers = #tpu.dot_dimension_numbers<[1], [0], [0], [1], [0, 0, 1, 1], [], []>} : vector<8x8xbf16>, vector<8x8xbf16>, vector<8x8xf32> -> vector<8x8xf32>
    %292 = tpu.concatenate %228, %249, %270, %291 in 1 : vector<8x8xf32>, vector<8x8xf32>, vector<8x8xf32>, vector<8x8xf32> -> vector<8x32xf32>
    %c1_103 = arith.constant 1 : index
    %c0_104 = arith.constant 0 : index
    %c0_105 = arith.constant 0 : index
    %293 = vector.load %arg7[%c1_103, %c0_104, %c0_105] : memref<2x32x32xbf16, #tpu.memory_space<vmem>>, vector<1x32x32xbf16>
    %294 = vector.shape_cast %293 : vector<1x32x32xbf16> to vector<32x32xbf16>
    %295 = arith.truncf %292 : vector<8x32xf32> to vector<8x32xbf16>
    %cst_106 = arith.constant dense<0.000000e+00> : vector<8x32xf32>
    %296 = tpu.matmul %295, %294, %cst_106 {dimension_numbers = #tpu.dot_dimension_numbers<[1], [0], [0], [1], [0, 0, 1, 1], [], []>} : vector<8x32xbf16>, vector<32x32xbf16>, vector<8x32xf32> -> vector<8x32xf32>
    %c1_107 = arith.constant 1 : index
    %c0_108 = arith.constant 0 : index
    %c0_109 = arith.constant 0 : index
    %297 = vector.load %arg8[%c1_107, %c0_108, %c0_109] : memref<2x1x32xf32, #tpu.memory_space<vmem>>, vector<1x1x32xf32>
    %298 = vector.shape_cast %297 : vector<1x1x32xf32> to vector<1x32xf32>
    %299 = vector.broadcast %298 : vector<1x32xf32> to vector<8x32xf32>
    %300 = arith.addf %296, %299 : vector<8x32xf32>
    %301 = arith.addf %300, %199 : vector<8x32xf32>
    %c1_110 = arith.constant 1 : index
    %c0_111 = arith.constant 0 : index
    %c0_112 = arith.constant 0 : index
    %302 = vector.load %arg9[%c1_110, %c0_111, %c0_112] : memref<2x1x32xf32, #tpu.memory_space<vmem>>, vector<1x1x32xf32>
    %303 = vector.shape_cast %302 : vector<1x1x32xf32> to vector<1x32xf32>
    %c1_113 = arith.constant 1 : index
    %c0_114 = arith.constant 0 : index
    %c0_115 = arith.constant 0 : index
    %304 = vector.load %arg10[%c1_113, %c0_114, %c0_115] : memref<2x1x32xf32, #tpu.memory_space<vmem>>, vector<1x1x32xf32>
    %305 = vector.shape_cast %304 : vector<1x1x32xf32> to vector<1x32xf32>
    %cst_116 = arith.constant dense<0.000000e+00> : vector<8xf32>
    %306 = vector.multi_reduction <add>, %301, %cst_116 [1] : vector<8x32xf32> to vector<8xf32>
    %307 = vector.shape_cast %306 : vector<8xf32> to vector<8x1xf32>
    %cst_117 = arith.constant 3.200000e+01 : f32
    %308 = vector.broadcast %cst_117 : f32 to vector<8x1xf32>
    %309 = arith.divf %307, %308 : vector<8x1xf32>
    %310 = vector.broadcast %309 : vector<8x1xf32> to vector<8x32xf32>
    %311 = arith.subf %301, %310 : vector<8x32xf32>
    %312 = arith.mulf %311, %311 : vector<8x32xf32>
    %cst_118 = arith.constant dense<0.000000e+00> : vector<8xf32>
    %313 = vector.multi_reduction <add>, %312, %cst_118 [1] : vector<8x32xf32> to vector<8xf32>
    %314 = vector.shape_cast %313 : vector<8xf32> to vector<8x1xf32>
    %cst_119 = arith.constant 3.200000e+01 : f32
    %315 = vector.broadcast %cst_119 : f32 to vector<8x1xf32>
    %316 = arith.divf %314, %315 : vector<8x1xf32>
    %cst_120 = arith.constant 9.99999996E-13 : f32
    %317 = vector.broadcast %cst_120 : f32 to vector<8x1xf32>
    %318 = arith.addf %316, %317 : vector<8x1xf32>
    %319 = math.rsqrt %318 : vector<8x1xf32>
    %320 = vector.broadcast %319 : vector<8x1xf32> to vector<8x32xf32>
    %321 = arith.mulf %311, %320 : vector<8x32xf32>
    %322 = vector.broadcast %303 : vector<1x32xf32> to vector<8x32xf32>
    %323 = arith.mulf %321, %322 : vector<8x32xf32>
    %324 = vector.broadcast %305 : vector<1x32xf32> to vector<8x32xf32>
    %325 = arith.addf %323, %324 : vector<8x32xf32>
    %c1_121 = arith.constant 1 : index
    %c0_122 = arith.constant 0 : index
    %c0_123 = arith.constant 0 : index
    %326 = vector.load %arg11[%c1_121, %c0_122, %c0_123] : memref<2x32x64xbf16, #tpu.memory_space<vmem>>, vector<1x32x64xbf16>
    %327 = vector.shape_cast %326 : vector<1x32x64xbf16> to vector<32x64xbf16>
    %328 = arith.truncf %325 : vector<8x32xf32> to vector<8x32xbf16>
    %cst_124 = arith.constant dense<0.000000e+00> : vector<8x64xf32>
    %329 = tpu.matmul %328, %327, %cst_124 {dimension_numbers = #tpu.dot_dimension_numbers<[1], [0], [0], [1], [0, 0, 1, 1], [], []>} : vector<8x32xbf16>, vector<32x64xbf16>, vector<8x64xf32> -> vector<8x64xf32>
    %c1_125 = arith.constant 1 : index
    %c0_126 = arith.constant 0 : index
    %c0_127 = arith.constant 0 : index
    %330 = vector.load %arg12[%c1_125, %c0_126, %c0_127] : memref<2x1x64xf32, #tpu.memory_space<vmem>>, vector<1x1x64xf32>
    %331 = vector.shape_cast %330 : vector<1x1x64xf32> to vector<1x64xf32>
    %332 = vector.broadcast %331 : vector<1x64xf32> to vector<8x64xf32>
    %333 = arith.addf %329, %332 : vector<8x64xf32>
    %cst_128 = arith.constant 5.000000e-01 : f32
    %334 = vector.broadcast %cst_128 : f32 to vector<8x64xf32>
    %335 = arith.mulf %334, %333 : vector<8x64xf32>
    %cst_129 = arith.constant 0.707106769 : f32
    %336 = vector.broadcast %cst_129 : f32 to vector<8x64xf32>
    %337 = arith.mulf %333, %336 : vector<8x64xf32>
    %338 = math.erf %337 : vector<8x64xf32>
    %cst_130 = arith.constant 1.000000e+00 : f32
    %339 = vector.broadcast %cst_130 : f32 to vector<8x64xf32>
    %340 = arith.addf %339, %338 : vector<8x64xf32>
    %341 = arith.mulf %335, %340 : vector<8x64xf32>
    %c1_131 = arith.constant 1 : index
    %c0_132 = arith.constant 0 : index
    %c0_133 = arith.constant 0 : index
    %342 = vector.load %arg13[%c1_131, %c0_132, %c0_133] : memref<2x64x32xbf16, #tpu.memory_space<vmem>>, vector<1x64x32xbf16>
    %343 = vector.shape_cast %342 : vector<1x64x32xbf16> to vector<64x32xbf16>
    %344 = arith.truncf %341 : vector<8x64xf32> to vector<8x64xbf16>
    %cst_134 = arith.constant dense<0.000000e+00> : vector<8x32xf32>
    %345 = tpu.matmul %344, %343, %cst_134 {dimension_numbers = #tpu.dot_dimension_numbers<[1], [0], [0], [1], [0, 0, 1, 1], [], []>} : vector<8x64xbf16>, vector<64x32xbf16>, vector<8x32xf32> -> vector<8x32xf32>
    %c1_135 = arith.constant 1 : index
    %c0_136 = arith.constant 0 : index
    %c0_137 = arith.constant 0 : index
    %346 = vector.load %arg14[%c1_135, %c0_136, %c0_137] : memref<2x1x32xf32, #tpu.memory_space<vmem>>, vector<1x1x32xf32>
    %347 = vector.shape_cast %346 : vector<1x1x32xf32> to vector<1x32xf32>
    %348 = vector.broadcast %347 : vector<1x32xf32> to vector<8x32xf32>
    %349 = arith.addf %345, %348 : vector<8x32xf32>
    %350 = arith.addf %349, %325 : vector<8x32xf32>
    %c1_138 = arith.constant 1 : index
    %c0_139 = arith.constant 0 : index
    %c0_140 = arith.constant 0 : index
    %351 = vector.load %arg15[%c1_138, %c0_139, %c0_140] : memref<2x1x32xf32, #tpu.memory_space<vmem>>, vector<1x1x32xf32>
    %352 = vector.shape_cast %351 : vector<1x1x32xf32> to vector<1x32xf32>
    %c1_141 = arith.constant 1 : index
    %c0_142 = arith.constant 0 : index
    %c0_143 = arith.constant 0 : index
    %353 = vector.load %arg16[%c1_141, %c0_142, %c0_143] : memref<2x1x32xf32, #tpu.memory_space<vmem>>, vector<1x1x32xf32>
    %354 = vector.shape_cast %353 : vector<1x1x32xf32> to vector<1x32xf32>
    %cst_144 = arith.constant dense<0.000000e+00> : vector<8xf32>
    %355 = vector.multi_reduction <add>, %350, %cst_144 [1] : vector<8x32xf32> to vector<8xf32>
    %356 = vector.shape_cast %355 : vector<8xf32> to vector<8x1xf32>
    %cst_145 = arith.constant 3.200000e+01 : f32
    %357 = vector.broadcast %cst_145 : f32 to vector<8x1xf32>
    %358 = arith.divf %356, %357 : vector<8x1xf32>
    %359 = vector.broadcast %358 : vector<8x1xf32> to vector<8x32xf32>
    %360 = arith.subf %350, %359 : vector<8x32xf32>
    %361 = arith.mulf %360, %360 : vector<8x32xf32>
    %cst_146 = arith.constant dense<0.000000e+00> : vector<8xf32>
    %362 = vector.multi_reduction <add>, %361, %cst_146 [1] : vector<8x32xf32> to vector<8xf32>
    %363 = vector.shape_cast %362 : vector<8xf32> to vector<8x1xf32>
    %cst_147 = arith.constant 3.200000e+01 : f32
    %364 = vector.broadcast %cst_147 : f32 to vector<8x1xf32>
    %365 = arith.divf %363, %364 : vector<8x1xf32>
    %cst_148 = arith.constant 9.99999996E-13 : f32
    %366 = vector.broadcast %cst_148 : f32 to vector<8x1xf32>
    %367 = arith.addf %365, %366 : vector<8x1xf32>
    %368 = math.rsqrt %367 : vector<8x1xf32>
    %369 = vector.broadcast %368 : vector<8x1xf32> to vector<8x32xf32>
    %370 = arith.mulf %360, %369 : vector<8x32xf32>
    %371 = vector.broadcast %352 : vector<1x32xf32> to vector<8x32xf32>
    %372 = arith.mulf %370, %371 : vector<8x32xf32>
    %373 = vector.broadcast %354 : vector<1x32xf32> to vector<8x32xf32>
    %374 = arith.addf %372, %373 : vector<8x32xf32>
    %c0_149 = arith.constant 0 : index
    %c0_150 = arith.constant 0 : index
    %375 = vector.load %arg17[%c0_149, %c0_150] : memref<32x128xbf16, #tpu.memory_space<vmem>>, vector<32x128xbf16>
    %376 = arith.truncf %374 : vector<8x32xf32> to vector<8x32xbf16>
    %cst_151 = arith.constant dense<0.000000e+00> : vector<8x128xf32>
    %377 = tpu.matmul %376, %375, %cst_151 {dimension_numbers = #tpu.dot_dimension_numbers<[1], [0], [0], [1], [0, 0, 1, 1], [], []>} : vector<8x32xbf16>, vector<32x128xbf16>, vector<8x128xf32> -> vector<8x128xf32>
    %c0_152 = arith.constant 0 : index
    %c0_153 = arith.constant 0 : index
    %378 = vector.load %arg18[%c0_152, %c0_153] : memref<1x128xf32, #tpu.memory_space<vmem>>, vector<1x128xf32>
    %379 = vector.broadcast %378 : vector<1x128xf32> to vector<8x128xf32>
    %380 = arith.addf %377, %379 : vector<8x128xf32>
    %c0_154 = arith.constant 0 : index
    %c0_155 = arith.constant 0 : index
    %381 = vector.load %arg19[%c0_154, %c0_155] : memref<8x128xf32, #tpu.memory_space<vmem>>, vector<8x128xf32>
    tpu.vector_store %arg19[%c0_154, %c0_155], %380 {strides = array<i32>} : memref<8x128xf32, #tpu.memory_space<vmem>>, vector<8x128xf32>,
    return
  }
  func.func @transform_0(%arg0: i32) -> (i32, i32) {
    %c0_i32 = arith.constant 0 : i32
    %c0_i32_0 = arith.constant 0 : i32
    return %arg0, %c0_i32 : i32, i32
  }
  func.func @transform_1(%arg0: i32) -> (i32, i32, i32) {
    %c0_i32 = arith.constant 0 : i32
    %c0_i32_0 = arith.constant 0 : i32
    %c0_i32_1 = arith.constant 0 : i32
    return %arg0, %c0_i32, %c0_i32_0 : i32, i32, i32
  }
  func.func @transform_2(%arg0: i32) -> (i32, i32) {
    %c0_i32 = arith.constant 0 : i32
    %c0_i32_0 = arith.constant 0 : i32
    %c0_i32_1 = arith.constant 0 : i32
    return %c0_i32, %c0_i32_0 : i32, i32
  }
  func.func @transform_3(%arg0: i32) -> (i32, i32) {
    %c0_i32 = arith.constant 0 : i32
    %c0_i32_0 = arith.constant 0 : i32
    %c0_i32_1 = arith.constant 0 : i32
    return %c0_i32, %c0_i32_0 : i32, i32
  }
  func.func @transform_4(%arg0: i32) -> (i32, i32, i32) {
    %c0_i32 = arith.constant 0 : i32
    %c0_i32_0 = arith.constant 0 : i32
    %c0_i32_1 = arith.constant 0 : i32
    %c0_i32_2 = arith.constant 0 : i32
    return %c0_i32, %c0_i32_0, %c0_i32_1 : i32, i32, i32
  }
  func.func @transform_5(%arg0: i32) -> (i32, i32, i32) {
    %c0_i32 = arith.constant 0 : i32
    %c0_i32_0 = arith.constant 0 : i32
    %c0_i32_1 = arith.constant 0 : i32
    %c0_i32_2 = arith.constant 0 : i32
    return %c0_i32, %c0_i32_0, %c0_i32_1 : i32, i32, i32
  }
  func.func @transform_6(%arg0: i32) -> (i32, i32, i32) {
    %c0_i32 = arith.constant 0 : i32
    %c0_i32_0 = arith.constant 0 : i32
    %c0_i32_1 = arith.constant 0 : i32
    %c0_i32_2 = arith.constant 0 : i32
    return %c0_i32, %c0_i32_0, %c0_i32_1 : i32, i32, i32
  }
  func.func @transform_7(%arg0: i32) -> (i32, i32, i32) {
    %c0_i32 = arith.constant 0 : i32
    %c0_i32_0 = arith.constant 0 : i32
    %c0_i32_1 = arith.constant 0 : i32
    %c0_i32_2 = arith.constant 0 : i32
    return %c0_i32, %c0_i32_0, %c0_i32_1 : i32, i32, i32
  }
  func.func @transform_8(%arg0: i32) -> (i32, i32, i32) {
    %c0_i32 = arith.constant 0 : i32
    %c0_i32_0 = arith.constant 0 : i32
    %c0_i32_1 = arith.constant 0 : i32
    %c0_i32_2 = arith.constant 0 : i32
    return %c0_i32, %c0_i32_0, %c0_i32_1 : i32, i32, i32
  }
  func.func @transform_9(%arg0: i32) -> (i32, i32, i32) {
    %c0_i32 = arith.constant 0 : i32
    %c0_i32_0 = arith.constant 0 : i32
    %c0_i32_1 = arith.constant 0 : i32
    %c0_i32_2 = arith.constant 0 : i32
    return %c0_i32, %c0_i32_0, %c0_i32_1 : i32, i32, i32
  }
  func.func @transform_10(%arg0: i32) -> (i32, i32, i32) {
    %c0_i32 = arith.constant 0 : i32
    %c0_i32_0 = arith.constant 0 : i32
    %c0_i32_1 = arith.constant 0 : i32
    %c0_i32_2 = arith.constant 0 : i32
    return %c0_i32, %c0_i32_0, %c0_i32_1 : i32, i32, i32
  }
  func.func @transform_11(%arg0: i32) -> (i32, i32, i32) {
    %c0_i32 = arith.constant 0 : i32
    %c0_i32_0 = arith.constant 0 : i32
    %c0_i32_1 = arith.constant 0 : i32
    %c0_i32_2 = arith.constant 0 : i32
    return %c0_i32, %c0_i32_0, %c0_i32_1 : i32, i32, i32
  }
  func.func @transform_12(%arg0: i32) -> (i32, i32, i32) {
    %c0_i32 = arith.constant 0 : i32
    %c0_i32_0 = arith.constant 0 : i32
    %c0_i32_1 = arith.constant 0 : i32
    %c0_i32_2 = arith.constant 0 : i32
    return %c0_i32, %c0_i32_0, %c0_i32_1 : i32, i32, i32
  }
  func.func @transform_13(%arg0: i32) -> (i32, i32, i32) {
    %c0_i32 = arith.constant 0 : i32
    %c0_i32_0 = arith.constant 0 : i32
    %c0_i32_1 = arith.constant 0 : i32
    %c0_i32_2 = arith.constant 0 : i32
    return %c0_i32, %c0_i32_0, %c0_i32_1 : i32, i32, i32
  }
  func.func @transform_14(%arg0: i32) -> (i32, i32, i32) {
    %c0_i32 = arith.constant 0 : i32
    %c0_i32_0 = arith.constant 0 : i32
    %c0_i32_1 = arith.constant 0 : i32
    %c0_i32_2 = arith.constant 0 : i32
    return %c0_i32, %c0_i32_0, %c0_i32_1 : i32, i32, i32
  }
  func.func @transform_15(%arg0: i32) -> (i32, i32, i32) {
    %c0_i32 = arith.constant 0 : i32
    %c0_i32_0 = arith.constant 0 : i32
    %c0_i32_1 = arith.constant 0 : i32
    %c0_i32_2 = arith.constant 0 : i32
    return %c0_i32, %c0_i32_0, %c0_i32_1 : i32, i32, i32
  }
  func.func @transform_16(%arg0: i32) -> (i32, i32) {
    %c0_i32 = arith.constant 0 : i32
    %c0_i32_0 = arith.constant 0 : i32
    %c0_i32_1 = arith.constant 0 : i32
    return %c0_i32, %c0_i32_0 : i32, i32
  }
  func.func @transform_17(%arg0: i32) -> (i32, i32) {
    %c0_i32 = arith.constant 0 : i32
    %c0_i32_0 = arith.constant 0 : i32
    %c0_i32_1 = arith.constant 0 : i32
    return %c0_i32, %c0_i32_0 : i32, i32
  }
  func.func @transform_18(%arg0: i32) -> (i32, i32) {
    %c0_i32 = arith.constant 0 : i32
    %c0_i32_0 = arith.constant 0 : i32
    return %arg0, %c0_i32 : i32, i32
  }
}

</mosaic_0001>

<bundles_post_ra>
// kernel: transformer_forward.1
= control target key start
LH: loop header
LB: loop body
LE: loop exit
PB: predicated region body
PF: predicated region fallthrough
CT: control target
= control target key end

     0   :  { %s2934_s27 = smov 0   ;;  %s3322_s0 = inlined_call_operand.vmem [shape: f32[16,32], index: 0, kind: input, shape index: {}]   ;;  %s3323_s1 = inlined_call_operand.vmem [shape: f32[2,1,8], index: 1, kind: input, shape index: {}]   ;;  %s3324_s2 = inlined_call_operand.vmem [shape: f32[1,32], index: 2, kind: input, shape index: {}]   ;;  %s3325_s3 = inlined_call_operand.vmem [shape: f32[1,32], index: 3, kind: input, shape index: {}]   ;;  %s3326_s4 = inlined_call_operand.vmem [shape: bf16[2,32,96], index: 4, kind: input, shape index: {}]   ;;  %s3327_s5 = inlined_call_operand.vmem [shape: f32[2,1,96], index: 5, kind: input, shape index: {}]   ;;  %s3328_s6 = inlined_call_operand.vmem [shape: bf16[2,32,32], index: 6, kind: input, shape index: {}]   ;;  %s3329_s7 = inlined_call_operand.vmem [shape: f32[2,1,32], index: 7, kind: input, shape index: {}]   ;;  %s3330_s8 = inlined_call_operand.vmem [shape: f32[2,1,32], index: 8, kind: input, shape index: {}]   ;;  %s3331_s9 = inlined_call_operand.vmem [shape: f32[2,1,32], index: 9, kind: input, shape index: {}]   ;;  %s3332_s10 = inlined_call_operand.vmem [shape: bf16[2,32,64], index: 10, kind: input, shape index: {}]   ;;  %s3333_s11 = inlined_call_operand.vmem [shape: f32[2,1,64], index: 11, kind: input, shape index: {}]   ;;  %s3334_s12 = inlined_call_operand.vmem [shape: bf16[2,64,32], index: 12, kind: input, shape index: {}]   ;;  %s3335_s13 = inlined_call_operand.vmem [shape: f32[2,1,32], index: 13, kind: input, shape index: {}]   ;;  %s3336_s14 = inlined_call_operand.vmem [shape: f32[2,1,32], index: 14, kind: input, shape index: {}]   ;;  %s3337_s15 = inlined_call_operand.vmem [shape: f32[2,1,32], index: 15, kind: input, shape index: {}]   ;;  %s3338_s16 = inlined_call_operand.vmem [shape: bf16[32,128], index: 16, kind: input, shape index: {}]   ;;  %s3339_s17 = inlined_call_operand.vmem [shape: f32[1,128], index: 17, kind: input, shape index: {}]   ;;  %s3340_s18 = inlined_call_operand.vmem [shape: f32[16,128], index: 18, kind: output, shape index: {}]  }
   0x1   :  { %3350 = sst [smem:[#allocation2_spill]] %s3322_s0 }
   0x2   :  { %3351 = sst [smem:[#allocation3_spill]] %s3323_s1 }
   0x3   :  { %3352 = sst [smem:[#allocation4_spill]] %s3324_s2 }
   0x4 LB: > { %s2380_s28 = sadd.s32 4294967295, %s2821_s27   ;;  %p2384_p0 = scmp.ge.s32.totalorder %s2821_s27, 1  ;;  %s2821_s27 = sphi %s2934_s27, %s28_s27  }
   0x5   : > { %p519_p1 = scmp.lt.s32.totalorder %s2821_s27, 3 }
   0x7   : > { %p520_p2 = pnand %p2384_p0, %p519_p1 }
   0x8   : > { %p574_p3 = scmp.lt.s32.totalorder (!%p520_p2), %s2380_s28, 1  ;;  %vm589_vm0 = vcmask (!%p520_p2), 261120   ;;  %s3353_s19 = sld [smem:[#allocation2_spill]] (!%p520_p2)  ;;  %v2747_v7 = vld [vmem:[%s3326_s4] sm:$0xff] (!%p520_p2)   ;;  %v2823_v8 = vmov (!%p520_p2), 0.0   ;;  %v2748_v9 = vld [vmem:[%s3326_s4 + $0x8] sm:$0xff] (!%p520_p2)  }
   0x9   : > { %523 = sbr.rel (%p520_p2) target bundleno = 5660 (0x161c), region = 92  ;;  %2547 = vmatprep.subr.bf16.mxu0 (!%p520_p2), %v2823_v8  ;;  %2555 = vmatprep.subr.bf16.mxu1 (!%p520_p2), %v2823_v8  ;;  %vm2824_vm1 = vmmov (!%p520_p2), 0   ;;  %s3354_s25 = sld [smem:[#allocation4_spill]] (!%p520_p2)  ;;  %v2388_v16 = vld [vmem:[%s3325_s3] ss:$0 sm:$0xff] (!%p520_p2)  ;;  %vm696_vm2 = vcmask (!%p520_p2), 64512  }
   0xa   : > { %2548 = vmatpush3.bf16.msra.mxu0 (!%p520_p2), %v2747_v7  ;;  %2551 = vmatprep.mubr.msk.bf16.mxu0 (!%p520_p2), %vm2824_vm1, %v2823_v8  ;;  %v2389_v20 = vld [vmem:[%s3327_s5] ss:$0 sm:$0xff] (!%p520_p2)  ;;  %s2826_s20 = smov (!%p520_p2), 96   ;;  %s2827_s21 = smov (!%p520_p2), 88   ;;  %vm760_vm3 = vcmask (!%p520_p2), 1043456   ;;  %vm1147_vm4 = vcmask (!%p520_p2), 130048  }
   0xb   : > { %2549 = vmatprep.subr.bf16.mxu0 (!%p520_p2), %v2823_v8  ;;  %2557 = vmatprep.mubr.msk.bf16.mxu1 (!%p520_p2), %vm2824_vm1, %v2823_v8  ;;  %s2828_s22 = smov (!%p520_p2), 80   ;;  %s2829_s2 = smov (!%p520_p2), 112   ;;  %vm1149_vm5 = vcmask (!%p520_p2), 195584   ;;  %vm1360_vm6 = vcmask (!%p520_p2), 523264  }
   0xc   : > { %s2830_s23 = smov (!%p520_p2), 72   ;;  %s3349_s24 = smov (!%p520_p2), 104  }
   0xd   : > { %s3355_s30 = sld [smem:[#allocation3_spill]] (!%p520_p2)  ;;  %s3343_s26 = smov (!%p520_p2), 48  }
   0xe   : > { %2550 = vmatpush3.bf16.msra.mxu0 (!%p520_p2), %v2748_v9 }
   0xf   : > { %2561 = vmatprep.subr.bf16.mxu0 (!%p520_p2), %v2823_v8  ;;  %v2387_v14 = vld [vmem:[%s3354_s25] ss:$0 sm:$0xff] (!%p520_p2)  ;;  %s3344_s25 = smov (!%p520_p2), 56  }
  0x10   : > { %s3366_s28 = smov (!%p574_p3, %s2380_s28), 1 }
  0x11   : > { %s3341_s29 = sshll.u32 %s3366_s28, 3 }
  0x12   : > { %s577_s1 = scalar_lea.vmem %s3353_s19, %s3341_s29  ;;  %s3345_s19 = smov 64  }
  0x13   : > { %v586_v0 = vld [vmem:[%s577_s1] sm:$0xff]  ;;  %s2825_s1 = smov 120   ;;  %s580_s0 = scalar_lea.vmem %s3355_s30, %s3366_s28 }
  0x14   : > { %v590_v1 = vsel %vm589_vm0, %v586_v0, 0.0  ;;  %v3023_v38 = vld [vmem:[%s580_s0] ss:$0 sm:$0xff]  ;;  %s3342_s30 = smov 40   ;;  %s3348_s0 = smov 8  }
  0x15   : > { %591 = vadd.xlane.f32.xlu0 %v590_v1  ;;  %s3346_s29 = smov 24  }
  0xa2   : > { %v592_v2 = vpop.xlane.xlu0 %591 }
  0xa3   : > { %v594_v3 = vmul.f32 0.03125, %v592_v2 }
  0xa5   : > { %v595_v4 = vsub.f32 %v586_v0, %v594_v3 }
  0xa7   : > { %v596_v5 = vmul.f32 %v595_v4, %v595_v4 }
  0xa9   : > { %v597_v6 = vsel %vm589_vm0, %v596_v5, 0.0 }
  0xaa   : > { %598 = vadd.xlane.f32.xlu0 %v597_v6 }
 0x137   : > { %v599_v10 = vpop.xlane.xlu0 %598 }
 0x138   : > { %v600_v11 = vmul.f32 0.03125, %v599_v10 }
 0x13a   : > { %v601_v12 = vadd.f32 1e-12, %v600_v11 }
 0x13c   : > { %2769 = vrsqrt.f32 %v601_v12 }
 0x146   : > { %v2770_v13 = vpop.eup %2769 }
 0x147   : > { %v603_v15 = vmul.f32 %v2770_v13, %v595_v4 }
 0x149   : > { %v610_v17 = vmul.f32 %v2387_v14, %v603_v15 }
 0x14b   : > { %v2972_v18 = vadd.f32 %v2388_v16, %v610_v17 }
 0x14d   : > { %v623_v19 = vpack.c.bf16 %v2972_v18, %v2972_v18 }
 0x14f   : > { %2552 = vmatmul.mubr.msk.bf16.vlgmr.msra.gmra.mrb[0].mxu0 %vm589_vm0, %v623_v19 }
 0x150   : > { %2563 = vmatprep.mubr.msk.bf16.mxu0 %vm2824_vm1, %v2823_v8 }
 0x222   : > { %v680_v21 = vpop.f32.mrb[0].mxu0 }
 0x223   : > { %v681_v22 = vadd.f32 %v2389_v20, %v680_v21  ;;  %v2553_v23 = vpop.f32.mrb[1].mxu0 }
 0x224   : > { %v683_v24 = vpop.f32.mrb[2].mxu0 }
 0x225   : > { %v2982_v25 = vpack.c.bf16 %v681_v22, %v681_v22  ;;  %v2554_v26 = vpop.f32.mrb[3].mxu0 }
 0x227   : > { %804 = vrot.lane.b32.xlu0 %v2982_v25, %s2825_s1  ;;  %694 = vrot.lane.b32.xlu1 %v2982_v25, %s2826_s20 }
 0x22b   : > { %806 = vrot.lane.b32.xlu1 %v2982_v25, %s2827_s21 }
 0x22f   : > { %916 = vrot.lane.b32.xlu1 %v2982_v25, %s2828_s22 }
 0x233   : > { %914 = vrot.lane.b32.xlu1 %v2982_v25, %s2829_s2 }
 0x237   : > { %1026 = vrot.lane.b32.xlu1 %v2982_v25, %s2830_s23 }
 0x23b   : > { %1024 = vrot.lane.b32.xlu1 %v2982_v25, %s3349_s24 }
 0x299   : > { %v695_v27 = vpop.permute.xlu1 %694  ;;  %v805_v32 = vpop.permute.xlu0 %804 }
 0x29a   : > { %v701_v28 = vsel %vm696_vm2, %v695_v27, 0 }
 0x29b   : > { %2556 = vmatpush3.bf16.xpose.msra.mxu1 %v701_v28 }
 0x29c   : > { %2567 = vmatprep.subr.bf16.mxu1 %v2823_v8 }
 0x29d   : > { %v807_v29 = vpop.permute.xlu1 %806 }
 0x29e   : > { %v812_v30 = vsel %vm696_vm2, %v807_v29, 0 }
 0x2a1   : > { %v917_v31 = vpop.permute.xlu1 %916 }
 0x2a2   : > { %2558 = vmatmul.mubr.msk.bf16.vlgmr.msra.gmra.mrb[0].mxu1 %vm696_vm2, %v2982_v25  ;;  %v922_v34 = vsel %vm696_vm2, %v917_v31, 0 }
 0x2a3   : > { %2568 = vmatpush3.bf16.xpose.msra.mxu1 %v812_v30  ;;  %2569 = vmatprep.mubr.msk.bf16.mxu1 %vm2824_vm1, %v2823_v8 }
 0x2a4   : > { %2579 = vmatprep.subr.bf16.mxu1 %v2823_v8 }
 0x2a5   : > { %v915_v33 = vpop.permute.xlu1 %914 }
 0x2a9   : > { %v1027_v35 = vpop.permute.xlu1 %1026 }
 0x2aa   : > { %2570 = vmatmul.mubr.msk.bf16.vlgmr.msra.gmra.mrb[4].mxu1 %vm696_vm2, %v805_v32  ;;  %v1032_v36 = vsel %vm696_vm2, %v1027_v35, 0 }
 0x2ab   : > { %2580 = vmatpush3.bf16.xpose.msra.mxu1 %v922_v34  ;;  %2581 = vmatprep.mubr.msk.bf16.mxu1 %vm2824_vm1, %v2823_v8 }
 0x2ac   : > { %2591 = vmatprep.subr.bf16.mxu1 %v2823_v8 }
 0x2ad   : > { %v1025_v37 = vpop.permute.xlu1 %1024 }
 0x2b2   : > { %2582 = vmatmul.mubr.msk.bf16.vlgmr.msra.gmra.mrb[8].mxu1 %vm696_vm2, %v915_v33 }
 0x2b3   : > { %2592 = vmatpush3.bf16.xpose.msra.mxu1 %v1032_v36  ;;  %2593 = vmatprep.mubr.msk.bf16.mxu1 %vm2824_vm1, %v2823_v8 }
 0x2b4   : > { %2603 = vmatprep.subr.bf16.mxu1 %v2823_v8 }
 0x2ba   : > { %2594 = vmatmul.mubr.msk.bf16.vlgmr.msra.gmra.mrb[12].mxu1 %vm696_vm2, %v1025_v37 }
 0x2bb   : > { %2607 = vmatprep.mubr.msk.bf16.mxu1 %vm2824_vm1, %v2823_v8 }
 0x375   : > { %v737_v39 = vpop.f32.mrb[0].mxu1 }
 0x376   : > { %v738_v40 = vadd.f32 %v3023_v38, %v737_v39  ;;  %v2559_v41 = vpop.f32.mrb[1].mxu1 }
 0x377   : > { %v740_v42 = vpop.f32.mrb[2].mxu1 }
 0x378   : > { %v2560_v43 = vpop.f32.mrb[3].mxu1  ;;  %v743_v44 = vsel %vm696_vm2, %v738_v40, -inf }
 0x379   : > { %744 = vmax.xlane.f32.xlu1 %v743_v44 }
 0x37d   : > { %v848_v45 = vpop.f32.mrb[4].mxu1 }
 0x37e   : > { %v849_v46 = vadd.f32 %v3023_v38, %v848_v45  ;;  %v2571_v47 = vpop.f32.mrb[5].mxu1 }
 0x37f   : > { %v851_v48 = vpop.f32.mrb[6].mxu1 }
 0x380   : > { %v2572_v49 = vpop.f32.mrb[7].mxu1  ;;  %v854_v50 = vsel %vm696_vm2, %v849_v46, -inf }
 0x381   : > { %855 = vmax.xlane.f32.xlu0 %v854_v50 }
 0x385   : > { %v958_v51 = vpop.f32.mrb[8].mxu1 }
 0x386   : > { %v959_v52 = vadd.f32 %v3023_v38, %v958_v51  ;;  %v2583_v53 = vpop.f32.mrb[9].mxu1 }
 0x387   : > { %v961_v54 = vpop.f32.mrb[10].mxu1 }
 0x388   : > { %v2584_v55 = vpop.f32.mrb[11].mxu1  ;;  %v964_v56 = vsel %vm696_vm2, %v959_v52, -inf  ;;  %v2749_v54 = vld [vmem:[%s3328_s6] sm:$0xff]  }
 0x389   : > { %965 = vmax.xlane.f32.xlu1 %v964_v56  ;;  %2604 = vmatpush3.bf16.msra.mxu1 %v2749_v54  ;;  %v2750_v55 = vld [vmem:[%s3328_s6 + $0x8] sm:$0xff]  }
 0x38a   : > { %2605 = vmatprep.subr.bf16.mxu1 %v2823_v8 }
 0x38d   : > { %v1068_v57 = vpop.f32.mrb[12].mxu1  ;;  %2606 = vmatpush3.bf16.msra.mxu1 %v2750_v55 }
 0x38e   : > { %v1069_v58 = vadd.f32 %v3023_v38, %v1068_v57  ;;  %v2595_v59 = vpop.f32.mrb[13].mxu1  ;;  %2619 = vmatprep.subr.bf16.mxu1 %v2823_v8 }
 0x38f   : > { %v1071_v60 = vpop.f32.mrb[14].mxu1 }
 0x390   : > { %v2596_v61 = vpop.f32.mrb[15].mxu1  ;;  %v1074_v62 = vsel %vm696_vm2, %v1069_v58, -inf }
 0x391   : > { %1075 = vmax.xlane.f32.xlu0 %v1074_v62 }
 0x406   : > { %v745_v63 = vpop.xlane.xlu1 %744 }
 0x407   : > { %v746_v0 = vsub.f32 %v738_v40, %v745_v63 }
 0x409   : > { %v747_v1 = vmul.f32 1.442695, %v746_v0 }
 0x40b   : > { %2771 = vpow2.f32 %v747_v1 }
 0x40e   : > { %v856_v2 = vpop.xlane.xlu0 %855 }
 0x40f   : > { %v857_v3 = vsub.f32 %v849_v46, %v856_v2 }
 0x411   : > { %v858_v4 = vmul.f32 1.442695, %v857_v3 }
 0x413   : > { %2773 = vpow2.f32 %v858_v4 }
 0x415   : > { %v2772_v5 = vpop.eup %2771 }
 0x416   : > { %v749_v6 = vsel %vm696_vm2, %v2772_v5, 0.0  ;;  %v966_v15 = vpop.xlane.xlu1 %965 }
 0x417   : > { %750 = vadd.xlane.f32.xlu1 %v749_v6  ;;  %v967_v16 = vsub.f32 %v959_v52, %v966_v15 }
 0x419   : > { %v968_v17 = vmul.f32 1.442695, %v967_v16 }
 0x41d   : > { %v2774_v7 = vpop.eup %2773 }
 0x41e   : > { %v1076_v9 = vpop.xlane.xlu0 %1075  ;;  %v860_v10 = vsel %vm696_vm2, %v2774_v7, 0.0 }
 0x41f   : > { %v1077_v11 = vsub.f32 %v1069_v58, %v1076_v9  ;;  %861 = vadd.xlane.f32.xlu0 %v860_v10 }
 0x421   : > { %v1078_v12 = vmul.f32 1.442695, %v1077_v11 }
 0x423   : > { %2775 = vpow2.f32 %v1078_v12 }
 0x424   : > { %2777 = vpow2.f32 %v968_v17 }
 0x428   : > { %755 = vrot.lane.b32.xlu1 %v2982_v25, %s3345_s19  ;;  %s3347_s19 = smov 16  }
 0x42d   : > { %v2776_v13 = vpop.eup %2775 }
 0x42e   : > { %v1080_v14 = vsel %vm696_vm2, %v2776_v13, 0.0  ;;  %v2778_v19 = vpop.eup %2777 }
 0x42f   : > { %1081 = vadd.xlane.f32.xlu0 %v1080_v14  ;;  %v970_v20 = vsel %vm696_vm2, %v2778_v19, 0.0 }
 0x445   : > { %866 = vrot.lane.b32.xlu0 %v2982_v25, %s3344_s25  ;;  %s3363_s25 = smov 24  }
 0x44c   : > { %971 = vadd.xlane.f32.xlu1 %v970_v20 }
 0x45d   : > { %976 = vrot.lane.b32.xlu1 %v2982_v25, %s3343_s26  ;;  %s3356_s26 = smov 104  }
 0x461   : > { %1086 = vrot.lane.b32.xlu1 %v2982_v25, %s3342_s30  ;;  %s3362_s30 = smov 16  }
 0x4a4   : > { %v751_v21 = vpop.xlane.xlu1 %750 }
 0x4a5   : > { %2779 = vrcp.f32 %v751_v21 }
 0x4a8   : > { %v756_v22 = vpop.permute.xlu1 %755 }
 0x4a9   : > { %v762_v23 = vsel %vm760_vm3, %v756_v22, 0  ;;  %v2751_v22 = vld [vmem:[%s3332_s10] sm:$0xff]  }
 0x4aa   : > { %2562 = vmatpush3.bf16.msra.mxu0 %v762_v23  ;;  %v2752_v23 = vld [vmem:[%s3332_s10 + $0x8] sm:$0xff]  }
 0x4ab   : > { %2573 = vmatprep.subr.bf16.mxu0 %v2823_v8 }
 0x4ac   : > { %v862_v26 = vpop.xlane.xlu0 %861 }
 0x4ad   : > { %2781 = vrcp.f32 %v862_v26 }
 0x4af   : > { %v2780_v24 = vpop.eup %2779 }
 0x4b0   : > { %v753_v27 = vmul.f32 %v2780_v24, %v2772_v5 }
 0x4b2   : > { %v754_v28 = vpack.c.bf16 %v753_v27, %v753_v27 }
 0x4b4   : > { %2564 = vmatmul.mubr.msk.bf16.vlgmr.msra.gmra.mrb[4].mxu0 %vm696_vm2, %v754_v28  ;;  %v2406_v28 = vld [vmem:[%s3330_s8] ss:$0 sm:$0xff] }
 0x4b5   : > { %2575 = vmatprep.mubr.msk.bf16.mxu0 %vm2824_vm1, %v2823_v8 }
 0x4b7   : > { %v2782_v25 = vpop.eup %2781 }
 0x4b8   : > { %v864_v30 = vmul.f32 %v2782_v25, %v2774_v7  ;;  %v2402_v7 = vld [vmem:[%s3329_s7] ss:$0 sm:$0xff] }
 0x4ba   : > { %v865_v33 = vpack.c.bf16 %v864_v30, %v864_v30 }
 0x4bc   : > { %v1082_v29 = vpop.xlane.xlu0 %1081 }
 0x4c0   : > { %v867_v31 = vpop.permute.xlu0 %866 }
 0x4c1   : > { %v872_v32 = vsel %vm760_vm3, %v867_v31, 0 }
 0x4c2   : > { %2574 = vmatpush3.bf16.msra.mxu0 %v872_v32 }
 0x4c3   : > { %2585 = vmatprep.subr.bf16.mxu0 %v2823_v8 }
 0x4c5   : > { %2576 = vmatmul.mubr.msk.bf16.vlgmr.msra.gmra.mrb[8].mxu0 %vm696_vm2, %v865_v33  ;;  %v2753_v33 = vld [vmem:[%s3334_s12] sm:$0xff]  }
 0x4c6   : > { %2587 = vmatprep.mubr.msk.bf16.mxu0 %vm2824_vm1, %v2823_v8 }
 0x4d9   : > { %v972_v34 = vpop.xlane.xlu1 %971 }
 0x4da   : > { %2783 = vrcp.f32 %v972_v34  ;;  %v2754_v34 = vld [vmem:[%s3334_s12 + $0x8] sm:$0xff]  }
 0x4db   : > { %2785 = vrcp.f32 %v1082_v29  ;;  %v2407_v29 = vld [vmem:[%s3331_s9] ss:$0 sm:$0xff] }
 0x4dd   : > { %v977_v35 = vpop.permute.xlu1 %976 }
 0x4de   : > { %v982_v36 = vsel %vm760_vm3, %v977_v35, 0  ;;  %v2755_v35 = vld [vmem:[%s3334_s12 + $0x10] sm:$0xff]  }
 0x4df   : > { %2586 = vmatpush3.bf16.msra.mxu0 %v982_v36  ;;  %v2756_v36 = vld [vmem:[%s3334_s12 + $0x18] sm:$0xff]  }
 0x4e0   : > { %2597 = vmatprep.subr.bf16.mxu0 %v2823_v8 }
 0x4e1   : > { %v1087_v40 = vpop.permute.xlu1 %1086 }
 0x4e2   : > { %v1092_v43 = vsel %vm760_vm3, %v1087_v40, 0 }
 0x4e4   : > { %v2784_v37 = vpop.eup %2783 }
 0x4e5   : > { %v974_v39 = vmul.f32 %v2784_v37, %v2778_v19  ;;  %v2786_v42 = vpop.eup %2785  ;;  %v2408_v37 = vld [vmem:[%s3333_s11] ss:$0 sm:$0xff] }
 0x4e6   : > { %v1084_v44 = vmul.f32 %v2786_v42, %v2776_v13 }
 0x4e7   : > { %v975_v41 = vpack.c.bf16 %v974_v39, %v974_v39 }
 0x4e8   : > { %v1085_v45 = vpack.c.bf16 %v1084_v44, %v1084_v44 }
 0x4e9   : > { %2588 = vmatmul.mubr.msk.bf16.vlgmr.msra.gmra.mrb[12].mxu0 %vm696_vm2, %v975_v41 }
 0x4ea   : > { %2598 = vmatpush3.bf16.msra.mxu0 %v1092_v43  ;;  %2599 = vmatprep.mubr.msk.bf16.mxu0 %vm2824_vm1, %v2823_v8 }
 0x4eb   : > { %2611 = vmatprep.subr.bf16.mxu0 %v2823_v8 }
 0x4f1   : > { %2600 = vmatmul.mubr.msk.bf16.vlgmr.msra.gmra.mrb[16].mxu0 %vm696_vm2, %v1085_v45 }
 0x4f2   : > { %2615 = vmatprep.mubr.msk.bf16.mxu0 %vm2824_vm1, %v2823_v8  ;;  %2612 = vmatpush3.bf16.msra.mxu0 %v2751_v22 }
 0x4f3   : > { %2613 = vmatprep.subr.bf16.mxu0 %v2823_v8 }
 0x4f6   : > { %2614 = vmatpush3.bf16.msra.mxu0 %v2752_v23 }
 0x4f7   : > { %2631 = vmatprep.subr.bf16.mxu0 %v2823_v8 }
 0x587   : > { %v798_v46 = vpop.f32.mrb[4].mxu0 }
 0x588   : > { %v2565_v47 = vpop.f32.mrb[5].mxu0 }
 0x589   : > { %v801_v48 = vpop.f32.mrb[6].mxu0 }
 0x58a   : > { %v2566_v49 = vpop.f32.mrb[7].mxu0 }
 0x598   : > { %v908_v50 = vpop.f32.mrb[8].mxu0 }
 0x599   : > { %1135 = vrot.lane.b32.xlu0 %v908_v50, %s3348_s0  ;;  %v2577_v51 = vpop.f32.mrb[9].mxu0  ;;  %v2412_v50 = vld [vmem:[%s3335_s13] ss:$0 sm:$0xff] }
 0x59a   : > { %v911_v52 = vpop.f32.mrb[10].mxu0 }
 0x59b   : > { %v2578_v53 = vpop.f32.mrb[11].mxu0 }
 0x5bc   : > { %v1018_v56 = vpop.f32.mrb[12].mxu0 }
 0x5bd   : > { %1139 = vrot.lane.b32.xlu1 %v1018_v56, %s3347_s19  ;;  %v2589_v57 = vpop.f32.mrb[13].mxu0 }
 0x5be   : > { %v1021_v58 = vpop.f32.mrb[14].mxu0 }
 0x5bf   : > { %v2590_v59 = vpop.f32.mrb[15].mxu0 }
 0x5c4   : > { %v1128_v60 = vpop.f32.mrb[16].mxu0 }
 0x5c5   : > { %1143 = vrot.lane.b32.xlu0 %v1128_v60, %s3346_s29  ;;  %v2601_v61 = vpop.f32.mrb[17].mxu0 }
 0x5c6   : > { %v1131_v62 = vpop.f32.mrb[18].mxu0 }
 0x5c7   : > { %v2602_v63 = vpop.f32.mrb[19].mxu0 }
 0x5c8   : > { %v2757_v63 = vld [vmem:[%s3326_s4 + $0x10] sm:$0xff]  }
 0x60b   : > { %v1136_v0 = vpop.permute.xlu0 %1135 }
 0x60c   : > { %v1146_v2 = vsel %vm696_vm2, %v798_v46, %v1136_v0  ;;  %v2758_v0 = vld [vmem:[%s3326_s4 + $0x18] sm:$0xff]  }
 0x62f   : > { %v1140_v1 = vpop.permute.xlu1 %1139 }
 0x630   : > { %v1148_v3 = vsel %vm1147_vm4, %v1146_v2, %v1140_v1 }
 0x637   : > { %v1144_v4 = vpop.permute.xlu0 %1143 }
 0x638   : > { %v1150_v5 = vsel %vm1149_vm5, %v1148_v3, %v1144_v4 }
 0x639   : > { %v1155_v6 = vpack.c.bf16 %v1150_v5, %v1150_v5  ;;  %v2418_v5 = vld [vmem:[%s3336_s14] ss:$0 sm:$0xff] }
 0x63b   : > { %2608 = vmatmul.mubr.msk.bf16.vlgmr.msra.gmra.mrb[16].mxu1 %vm589_vm0, %v1155_v6 }
 0x63c   : > { %2627 = vmatprep.mubr.msk.bf16.mxu1 %vm2824_vm1, %v2823_v8  ;;  %2620 = vmatpush3.bf16.msra.mxu1 %v2753_v33 }
 0x63d   : > { %2621 = vmatprep.subr.bf16.mxu1 %v2823_v8 }
 0x640   : > { %2622 = vmatpush3.bf16.msra.mxu1 %v2754_v34 }
 0x641   : > { %2623 = vmatprep.subr.bf16.mxu1 %v2823_v8 }
 0x644   : > { %2624 = vmatpush3.bf16.msra.mxu1 %v2755_v35 }
 0x645   : > { %2625 = vmatprep.subr.bf16.mxu1 %v2823_v8 }
 0x648   : > { %2626 = vmatpush3.bf16.msra.mxu1 %v2756_v36 }
 0x649   : > { %2645 = vmatprep.subr.bf16.mxu1 %v2823_v8 }
 0x70e   : > { %v1212_v9 = vpop.f32.mrb[16].mxu1 }
 0x70f   : > { %v1213_v10 = vadd.f32 %v2402_v7, %v1212_v9  ;;  %v2609_v11 = vpop.f32.mrb[17].mxu1  ;;  %v2419_v7 = vld [vmem:[%s3337_s15] ss:$0 sm:$0xff] }
 0x710   : > { %v1215_v12 = vpop.f32.mrb[18].mxu1 }
 0x711   : > { %v2610_v13 = vpop.f32.mrb[19].mxu1  ;;  %v1218_v14 = vadd.f32 %v1213_v10, %v2972_v18  ;;  %v2425_v12 = vld [vmem:[%s3327_s5 + $0x1] ss:$0 sm:$0xff] }
 0x713   : > { %v1221_v15 = vsel %vm589_vm0, %v1218_v14, 0.0 }
 0x714   : > { %1222 = vadd.xlane.f32.xlu1 %v1221_v15 }
 0x7a1   : > { %v1223_v16 = vpop.xlane.xlu1 %1222 }
 0x7a2   : > { %v1224_v17 = vmul.f32 0.03125, %v1223_v16 }
 0x7a4   : > { %v1225_v19 = vsub.f32 %v1218_v14, %v1224_v17 }
 0x7a6   : > { %v1226_v20 = vmul.f32 %v1225_v19, %v1225_v19 }
 0x7a8   : > { %v1227_v21 = vsel %vm589_vm0, %v1226_v20, 0.0 }
 0x7a9   : > { %1228 = vadd.xlane.f32.xlu0 %v1227_v21 }
 0x836   : > { %v1229_v18 = vpop.xlane.xlu0 %1228 }
 0x837   : > { %v1230_v24 = vmul.f32 0.03125, %v1229_v18 }
 0x839   : > { %v1231_v26 = vadd.f32 1e-12, %v1230_v24 }
 0x83b   : > { %2787 = vrsqrt.f32 %v1231_v26 }
 0x845   : > { %v2788_v27 = vpop.eup %2787 }
 0x846   : > { %v1233_v25 = vmul.f32 %v2788_v27, %v1225_v19 }
 0x848   : > { %v1240_v30 = vmul.f32 %v2406_v28, %v1233_v25 }
 0x84a   : > { %v1247_v31 = vadd.f32 %v2407_v29, %v1240_v30 }
 0x84c   : > { %v1252_v32 = vpack.c.bf16 %v1247_v31, %v1247_v31 }
 0x84e   : > { %2616 = vmatmul.mubr.msk.bf16.vlgmr.msra.gmra.mrb[20].mxu0 %vm589_vm0, %v1252_v32 }
 0x84f   : > { %2635 = vmatprep.mubr.msk.bf16.mxu0 %vm2824_vm1, %v2823_v8  ;;  %2632 = vmatpush3.bf16.msra.mxu0 %v2757_v63 }
 0x850   : > { %2633 = vmatprep.subr.bf16.mxu0 %v2823_v8 }
 0x853   : > { %2634 = vmatpush3.bf16.msra.mxu0 %v2758_v0 }
 0x854   : > { %2639 = vmatprep.subr.bf16.mxu0 %v2823_v8 }
 0x921   : > { %v1309_v39 = vpop.f32.mrb[20].mxu0 }
 0x922   : > { %v1310_v40 = vadd.f32 %v2408_v37, %v1309_v39  ;;  %v2617_v41 = vpop.f32.mrb[21].mxu0 }
 0x923   : > { %v1312_v42 = vpop.f32.mrb[22].mxu0 }
 0x924   : > { %v1316_v43 = vmul.f32 0.70710677, %v1310_v40  ;;  %v2618_v44 = vpop.f32.mrb[23].mxu0  ;;  %v1315_v46 = vmul.f32 0.5, %v1310_v40 }
 0x926   : > { %2789 = verf.f32 %v1316_v43 }
 0x930   : > { %v2790_v45 = vpop.eup %2789 }
 0x931   : > { %v1318_v47 = vadd.f32 1.0, %v2790_v45 }
 0x933   : > { %v1319_v48 = vmul.f32 %v1318_v47, %v1315_v46 }
 0x935   : > { %v1328_v49 = vpack.c.bf16 %v1319_v48, %v1319_v48 }
 0x937   : > { %2628 = vmatmul.mubr.msk.bf16.vlgmr.msra.gmra.mrb[20].mxu1 %vm1360_vm6, %v1328_v49 }
 0x938   : > { %2647 = vmatprep.mubr.msk.bf16.mxu1 %vm2824_vm1, %v2823_v8 }
 0xa0a   : > { %v1398_v51 = vpop.f32.mrb[20].mxu1 }
 0xa0b   : > { %v1399_v52 = vadd.f32 %v2412_v50, %v1398_v51  ;;  %v2629_v53 = vpop.f32.mrb[21].mxu1 }
 0xa0c   : > { %v1401_v54 = vpop.f32.mrb[22].mxu1 }
 0xa0d   : > { %v2630_v55 = vpop.f32.mrb[23].mxu1  ;;  %v1404_v56 = vadd.f32 %v1399_v52, %v1247_v31 }
 0xa0f   : > { %v1407_v57 = vsel %vm589_vm0, %v1404_v56, 0.0 }
 0xa10   : > { %1408 = vadd.xlane.f32.xlu0 %v1407_v57 }
 0xa9d   : > { %v1409_v58 = vpop.xlane.xlu0 %1408 }
 0xa9e   : > { %v1410_v59 = vmul.f32 0.03125, %v1409_v58 }
 0xaa0   : > { %v1411_v60 = vsub.f32 %v1404_v56, %v1410_v59 }
 0xaa2   : > { %v1412_v61 = vmul.f32 %v1411_v60, %v1411_v60 }
 0xaa4   : > { %v1413_v62 = vsel %vm589_vm0, %v1412_v61, 0.0 }
 0xaa5   : > { %1414 = vadd.xlane.f32.xlu1 %v1413_v62 }
 0xb32   : > { %v1415_v1 = vpop.xlane.xlu1 %1414 }
 0xb33   : > { %v1416_v2 = vmul.f32 0.03125, %v1415_v1 }
 0xb35   : > { %v1417_v3 = vadd.f32 1e-12, %v1416_v2 }
 0xb37   : > { %2791 = vrsqrt.f32 %v1417_v3 }
 0xb41   : > { %v2792_v4 = vpop.eup %2791 }
 0xb42   : > { %v1419_v6 = vmul.f32 %v2792_v4, %v1411_v60 }
 0xb44   : > { %v1426_v9 = vmul.f32 %v2418_v5, %v1419_v6 }
 0xb46   : > { %v3146_v10 = vadd.f32 %v2419_v7, %v1426_v9 }
 0xb48   : > { %v1439_v11 = vpack.c.bf16 %v3146_v10, %v3146_v10 }
 0xb4a   : > { %2636 = vmatmul.mubr.msk.bf16.vlgmr.msra.gmra.mrb[24].mxu0 %vm589_vm0, %v1439_v11 }
 0xb4b   : > { %2641 = vmatprep.mubr.msk.bf16.mxu0 %vm2824_vm1, %v2823_v8 }
 0xc1d   : > { %v1497_v13 = vpop.f32.mrb[24].mxu0 }
 0xc1e   : > { %v1498_v14 = vadd.f32 %v2425_v12, %v1497_v13  ;;  %v2637_v15 = vpop.f32.mrb[25].mxu0 }
 0xc1f   : > { %v1500_v16 = vpop.f32.mrb[26].mxu0 }
 0xc20   : > { %v3156_v17 = vpack.c.bf16 %v1498_v14, %v1498_v14  ;;  %v2638_v19 = vpop.f32.mrb[27].mxu0 }
 0xc22   : > { %1615 = vrot.lane.b32.xlu1 %v3156_v17, %s2827_s21  ;;  %1505 = vrot.lane.b32.xlu0 %v3156_v17, %s2826_s20  ;;  %s3358_s20 = smov 56   ;;  %s3359_s21 = smov 48  }
 0xc26   : > { %1613 = vrot.lane.b32.xlu1 %v3156_v17, %s2825_s1  ;;  %1725 = vrot.lane.b32.xlu0 %v3156_v17, %s2828_s22  ;;  %s3357_s1 = smov 64   ;;  %s3360_s22 = smov 40  }
 0xc2a   : > { %1723 = vrot.lane.b32.xlu1 %v3156_v17, %s2829_s2  ;;  %1835 = vrot.lane.b32.xlu0 %v3156_v17, %s2830_s23  ;;  %s3361_s2 = smov 8  }
 0xc2e   : > { %1833 = vrot.lane.b32.xlu1 %v3156_v17, %s3356_s26 }
 0xc94   : > { %v1506_v20 = vpop.permute.xlu0 %1505  ;;  %v1616_v22 = vpop.permute.xlu1 %1615 }
 0xc95   : > { %v1511_v21 = vsel %vm696_vm2, %v1506_v20, 0  ;;  %v1621_v23 = vsel %vm696_vm2, %v1616_v22, 0 }
 0xc96   : > { %2640 = vmatpush3.bf16.xpose.msra.mxu0 %v1511_v21 }
 0xc97   : > { %2651 = vmatprep.subr.bf16.mxu0 %v2823_v8 }
 0xc98   : > { %v1726_v18 = vpop.permute.xlu0 %1725  ;;  %v1614_v24 = vpop.permute.xlu1 %1613 }
 0xc99   : > { %v1731_v26 = vsel %vm696_vm2, %v1726_v18, 0 }
 0xc9c   : > { %v1836_v27 = vpop.permute.xlu0 %1835  ;;  %v1724_v28 = vpop.permute.xlu1 %1723 }
 0xc9d   : > { %2642 = vmatmul.mubr.msk.bf16.vlgmr.msra.gmra.mrb[28].mxu0 %vm696_vm2, %v3156_v17  ;;  %v1841_v25 = vsel %vm696_vm2, %v1836_v27, 0 }
 0xc9e   : > { %2652 = vmatpush3.bf16.xpose.msra.mxu0 %v1621_v23  ;;  %2653 = vmatprep.mubr.msk.bf16.mxu0 %vm2824_vm1, %v2823_v8 }
 0xc9f   : > { %2663 = vmatprep.subr.bf16.mxu0 %v2823_v8 }
 0xca0   : > { %v1834_v29 = vpop.permute.xlu1 %1833 }
 0xca5   : > { %2654 = vmatmul.mubr.msk.bf16.vlgmr.msra.gmra.mrb[32].mxu0 %vm696_vm2, %v1614_v24 }
 0xca6   : > { %2664 = vmatpush3.bf16.xpose.msra.mxu0 %v1731_v26  ;;  %2665 = vmatprep.mubr.msk.bf16.mxu0 %vm2824_vm1, %v2823_v8 }
 0xca7   : > { %2675 = vmatprep.subr.bf16.mxu0 %v2823_v8 }
 0xcad   : > { %2666 = vmatmul.mubr.msk.bf16.vlgmr.msra.gmra.mrb[36].mxu0 %vm696_vm2, %v1724_v28 }
 0xcae   : > { %2676 = vmatpush3.bf16.xpose.msra.mxu0 %v1841_v25  ;;  %2677 = vmatprep.mubr.msk.bf16.mxu0 %vm2824_vm1, %v2823_v8 }
 0xcaf   : > { %2687 = vmatprep.subr.bf16.mxu0 %v2823_v8 }
 0xcb5   : > { %2678 = vmatmul.mubr.msk.bf16.vlgmr.msra.gmra.mrb[40].mxu0 %vm696_vm2, %v1834_v29 }
 0xcb6   : > { %2691 = vmatprep.mubr.msk.bf16.mxu0 %vm2824_vm1, %v2823_v8 }
 0xd70   : > { %v1547_v30 = vpop.f32.mrb[28].mxu0 }
 0xd71   : > { %v1548_v31 = vadd.f32 %v3023_v38, %v1547_v30  ;;  %v2643_v32 = vpop.f32.mrb[29].mxu0 }
 0xd72   : > { %v1550_v33 = vpop.f32.mrb[30].mxu0 }
 0xd73   : > { %v2644_v34 = vpop.f32.mrb[31].mxu0  ;;  %v1553_v35 = vsel %vm696_vm2, %v1548_v31, -inf }
 0xd74   : > { %1554 = vmax.xlane.f32.xlu0 %v1553_v35 }
 0xd78   : > { %v1657_v36 = vpop.f32.mrb[32].mxu0 }
 0xd79   : > { %v1658_v37 = vadd.f32 %v3023_v38, %v1657_v36  ;;  %v2655_v39 = vpop.f32.mrb[33].mxu0 }
 0xd7a   : > { %v1660_v40 = vpop.f32.mrb[34].mxu0 }
 0xd7b   : > { %v2656_v41 = vpop.f32.mrb[35].mxu0  ;;  %v1663_v42 = vsel %vm696_vm2, %v1658_v37, -inf }
 0xd7c   : > { %1664 = vmax.xlane.f32.xlu1 %v1663_v42 }
 0xd80   : > { %v1767_v43 = vpop.f32.mrb[36].mxu0 }
 0xd81   : > { %v1768_v44 = vadd.f32 %v3023_v38, %v1767_v43  ;;  %v2667_v45 = vpop.f32.mrb[37].mxu0 }
 0xd82   : > { %v1770_v46 = vpop.f32.mrb[38].mxu0  ;;  %v2759_v45 = vld [vmem:[%s3328_s6 + $0x10] sm:$0xff]  }
 0xd83   : > { %v2668_v47 = vpop.f32.mrb[39].mxu0  ;;  %v1773_v48 = vsel %vm696_vm2, %v1768_v44, -inf  ;;  %2688 = vmatpush3.bf16.msra.mxu0 %v2759_v45  ;;  %v2760_v46 = vld [vmem:[%s3328_s6 + $0x18] sm:$0xff]  }
 0xd84   : > { %1774 = vmax.xlane.f32.xlu0 %v1773_v48  ;;  %2689 = vmatprep.subr.bf16.mxu0 %v2823_v8 }
 0xd87   : > { %2690 = vmatpush3.bf16.msra.mxu0 %v2760_v46 }
 0xd88   : > { %v1877_v49 = vpop.f32.mrb[40].mxu0  ;;  %2703 = vmatprep.subr.bf16.mxu0 %v2823_v8 }
 0xd89   : > { %v1878_v50 = vadd.f32 %v3023_v38, %v1877_v49  ;;  %v2679_v51 = vpop.f32.mrb[41].mxu0 }
 0xd8a   : > { %v1880_v52 = vpop.f32.mrb[42].mxu0 }
 0xd8b   : > { %v2680_v53 = vpop.f32.mrb[43].mxu0  ;;  %v1883_v54 = vsel %vm696_vm2, %v1878_v50, -inf }
 0xd8c   : > { %1884 = vmax.xlane.f32.xlu0 %v1883_v54 }
 0xe01   : > { %v1555_v55 = vpop.xlane.xlu0 %1554 }
 0xe02   : > { %v1556_v56 = vsub.f32 %v1548_v31, %v1555_v55 }
 0xe04   : > { %v1557_v57 = vmul.f32 1.442695, %v1556_v56 }
 0xe06   : > { %2793 = vpow2.f32 %v1557_v57 }
 0xe09   : > { %v1665_v58 = vpop.xlane.xlu1 %1664 }
 0xe0a   : > { %v1666_v59 = vsub.f32 %v1658_v37, %v1665_v58 }
 0xe0c   : > { %v1667_v60 = vmul.f32 1.442695, %v1666_v59 }
 0xe0e   : > { %2795 = vpow2.f32 %v1667_v60 }
 0xe10   : > { %v2794_v61 = vpop.eup %2793 }
 0xe11   : > { %v1559_v62 = vsel %vm696_vm2, %v2794_v61, 0.0  ;;  %v1775_v63 = vpop.xlane.xlu0 %1774 }
 0xe12   : > { %1560 = vadd.xlane.f32.xlu1 %v1559_v62  ;;  %v1776_v6 = vsub.f32 %v1768_v44, %v1775_v63  ;;  %v2442_v62 = vld [vmem:[%s3329_s7 + $0x1] ss:$0 sm:$0xff] }
 0xe14   : > { %v1777_v7 = vmul.f32 1.442695, %v1776_v6 }
 0xe18   : > { %v2796_v38 = vpop.eup %2795 }
 0xe19   : > { %v1885_v0 = vpop.xlane.xlu0 %1884  ;;  %v1669_v1 = vsel %vm696_vm2, %v2796_v38, 0.0 }
 0xe1a   : > { %v1886_v2 = vsub.f32 %v1878_v50, %v1885_v0  ;;  %1670 = vadd.xlane.f32.xlu0 %v1669_v1 }
 0xe1c   : > { %v1887_v3 = vmul.f32 1.442695, %v1886_v2 }
 0xe1e   : > { %2797 = vpow2.f32 %v1887_v3 }
 0xe1f   : > { %2799 = vpow2.f32 %v1777_v7 }
 0xe23   : > { %1565 = vrot.lane.b32.xlu1 %v3156_v17, %s3357_s1 }
 0xe28   : > { %v2798_v4 = vpop.eup %2797 }
 0xe29   : > { %v1889_v5 = vsel %vm696_vm2, %v2798_v4, 0.0  ;;  %v2800_v9 = vpop.eup %2799 }
 0xe2a   : > { %1890 = vadd.xlane.f32.xlu0 %v1889_v5  ;;  %v1779_v11 = vsel %vm696_vm2, %v2800_v9, 0.0 }
 0xe40   : > { %1675 = vrot.lane.b32.xlu0 %v3156_v17, %s3358_s20 }
 0xe47   : > { %1780 = vadd.xlane.f32.xlu1 %v1779_v11 }
 0xe58   : > { %1785 = vrot.lane.b32.xlu1 %v3156_v17, %s3359_s21 }
 0xe5c   : > { %1895 = vrot.lane.b32.xlu1 %v3156_v17, %s3360_s22 }
 0xe9f   : > { %v1561_v12 = vpop.xlane.xlu1 %1560 }
 0xea0   : > { %2801 = vrcp.f32 %v1561_v12  ;;  %v2761_v12 = vld [vmem:[%s3332_s10 + $0x10] sm:$0xff]  }
 0xea3   : > { %v1566_v13 = vpop.permute.xlu1 %1565 }
 0xea4   : > { %v1571_v14 = vsel %vm760_vm3, %v1566_v13, 0  ;;  %v2762_v13 = vld [vmem:[%s3332_s10 + $0x18] sm:$0xff]  }
 0xea5   : > { %2646 = vmatpush3.bf16.msra.mxu1 %v1571_v14 }
 0xea6   : > { %2657 = vmatprep.subr.bf16.mxu1 %v2823_v8 }
 0xea7   : > { %v1671_v16 = vpop.xlane.xlu0 %1670 }
 0xea8   : > { %2803 = vrcp.f32 %v1671_v16 }
 0xeaa   : > { %v2802_v15 = vpop.eup %2801 }
 0xeab   : > { %v1563_v19 = vmul.f32 %v2802_v15, %v2794_v61 }
 0xead   : > { %v1564_v20 = vpack.c.bf16 %v1563_v19, %v1563_v19  ;;  %v2448_v19 = vld [vmem:[%s3330_s8 + $0x1] ss:$0 sm:$0xff] }
 0xeaf   : > { %2648 = vmatmul.mubr.msk.bf16.vlgmr.msra.gmra.mrb[24].mxu1 %vm696_vm2, %v1564_v20 }
 0xeb0   : > { %2659 = vmatprep.mubr.msk.bf16.mxu1 %vm2824_vm1, %v2823_v8 }
 0xeb2   : > { %v2804_v21 = vpop.eup %2803 }
 0xeb3   : > { %v1673_v22 = vmul.f32 %v2804_v21, %v2796_v38  ;;  %v2449_v21 = vld [vmem:[%s3331_s9 + $0x1] ss:$0 sm:$0xff] }
 0xeb5   : > { %v1674_v24 = vpack.c.bf16 %v1673_v22, %v1673_v22 }
 0xeb7   : > { %v1891_v17 = vpop.xlane.xlu0 %1890 }
 0xebb   : > { %v1676_v23 = vpop.permute.xlu0 %1675 }
 0xebc   : > { %v1681_v18 = vsel %vm760_vm3, %v1676_v23, 0 }
 0xebd   : > { %2658 = vmatpush3.bf16.msra.mxu1 %v1681_v18  ;;  %v2763_v18 = vld [vmem:[%s3334_s12 + $0x20] sm:$0xff]  }
 0xebe   : > { %2669 = vmatprep.subr.bf16.mxu1 %v2823_v8 }
 0xec0   : > { %2660 = vmatmul.mubr.msk.bf16.vlgmr.msra.gmra.mrb[28].mxu1 %vm696_vm2, %v1674_v24  ;;  %v2764_v24 = vld [vmem:[%s3334_s12 + $0x28] sm:$0xff]  }
 0xec1   : > { %2671 = vmatprep.mubr.msk.bf16.mxu1 %vm2824_vm1, %v2823_v8 }
 0xed4   : > { %v1781_v26 = vpop.xlane.xlu1 %1780 }
 0xed5   : > { %2805 = vrcp.f32 %v1781_v26  ;;  %v2765_v26 = vld [vmem:[%s3334_s12 + $0x30] sm:$0xff]  }
 0xed6   : > { %2807 = vrcp.f32 %v1891_v17 }
 0xed8   : > { %v1786_v27 = vpop.permute.xlu1 %1785 }
 0xed9   : > { %v1791_v28 = vsel %vm760_vm3, %v1786_v27, 0  ;;  %v2766_v27 = vld [vmem:[%s3334_s12 + $0x38] sm:$0xff]  }
 0xeda   : > { %2670 = vmatpush3.bf16.msra.mxu1 %v1791_v28  ;;  %v2455_v28 = vld [vmem:[%s3333_s11 + $0x1] ss:$0 sm:$0xff] }
 0xedb   : > { %2681 = vmatprep.subr.bf16.mxu1 %v2823_v8 }
 0xedc   : > { %v1896_v30 = vpop.permute.xlu1 %1895 }
 0xedd   : > { %v1901_v33 = vsel %vm760_vm3, %v1896_v30, 0 }
 0xedf   : > { %v2806_v25 = vpop.eup %2805 }
 0xee0   : > { %v1783_v29 = vmul.f32 %v2806_v25, %v2800_v9  ;;  %v2808_v32 = vpop.eup %2807 }
 0xee1   : > { %v1893_v34 = vmul.f32 %v2808_v32, %v2798_v4 }
 0xee2   : > { %v1784_v31 = vpack.c.bf16 %v1783_v29, %v1783_v29 }
 0xee3   : > { %v1894_v35 = vpack.c.bf16 %v1893_v34, %v1893_v34 }
 0xee4   : > { %2672 = vmatmul.mubr.msk.bf16.vlgmr.msra.gmra.mrb[32].mxu1 %vm696_vm2, %v1784_v31 }
 0xee5   : > { %2682 = vmatpush3.bf16.msra.mxu1 %v1901_v33  ;;  %2683 = vmatprep.mubr.msk.bf16.mxu1 %vm2824_vm1, %v2823_v8 }
 0xee6   : > { %2695 = vmatprep.subr.bf16.mxu1 %v2823_v8 }
 0xeec   : > { %2684 = vmatmul.mubr.msk.bf16.vlgmr.msra.gmra.mrb[36].mxu1 %vm696_vm2, %v1894_v35 }
 0xeed   : > { %2699 = vmatprep.mubr.msk.bf16.mxu1 %vm2824_vm1, %v2823_v8  ;;  %2696 = vmatpush3.bf16.msra.mxu1 %v2761_v12 }
 0xeee   : > { %2697 = vmatprep.subr.bf16.mxu1 %v2823_v8 }
 0xef1   : > { %2698 = vmatpush3.bf16.msra.mxu1 %v2762_v13 }
 0xef2   : > { %2715 = vmatprep.subr.bf16.mxu1 %v2823_v8 }
 0xf82   : > { %v1607_v36 = vpop.f32.mrb[24].mxu1 }
 0xf83   : > { %v2649_v37 = vpop.f32.mrb[25].mxu1 }
 0xf84   : > { %v1610_v39 = vpop.f32.mrb[26].mxu1 }
 0xf85   : > { %v2650_v40 = vpop.f32.mrb[27].mxu1 }
 0xf86   : > { %v2468_v40 = vld [vmem:[%s3335_s13 + $0x1] ss:$0 sm:$0xff] }
 0xf93   : > { %v1717_v41 = vpop.f32.mrb[28].mxu1 }
 0xf94   : > { %1944 = vrot.lane.b32.xlu0 %v1717_v41, %s3361_s2  ;;  %v2661_v42 = vpop.f32.mrb[29].mxu1  ;;  %s3364_s2 = sshll.u32 %s3366_s28, 3 }
 0xf95   : > { %v1720_v43 = vpop.f32.mrb[30].mxu1  ;;  %s584_s24 = scalar_lea.vmem %s3340_s18, %s3364_s2 }
 0xf96   : > { %v2662_v44 = vpop.f32.mrb[31].mxu1 }
 0xfb7   : > { %v1827_v47 = vpop.f32.mrb[32].mxu1 }
 0xfb8   : > { %1948 = vrot.lane.b32.xlu1 %v1827_v47, %s3362_s30  ;;  %v2673_v48 = vpop.f32.mrb[33].mxu1 }
 0xfb9   : > { %v1830_v49 = vpop.f32.mrb[34].mxu1 }
 0xfba   : > { %v2674_v50 = vpop.f32.mrb[35].mxu1 }
 0xfbf   : > { %v1937_v51 = vpop.f32.mrb[36].mxu1 }
 0xfc0   : > { %1952 = vrot.lane.b32.xlu0 %v1937_v51, %s3363_s25  ;;  %v2685_v52 = vpop.f32.mrb[37].mxu1 }
 0xfc1   : > { %v1940_v53 = vpop.f32.mrb[38].mxu1 }
 0xfc2   : > { %v2686_v54 = vpop.f32.mrb[39].mxu1  ;;  %v2767_v53 = vld [vmem:[%s3338_s16] sm:$0xff]  }
 0xfc3   : > { %v2768_v54 = vld [vmem:[%s3338_s16 + $0x8] sm:$0xff]  }
0x1006   : > { %v1945_v55 = vpop.permute.xlu0 %1944 }
0x1007   : > { %v1955_v57 = vsel %vm696_vm2, %v1607_v36, %v1945_v55 }
0x102a   : > { %v1949_v56 = vpop.permute.xlu1 %1948 }
0x102b   : > { %v1956_v58 = vsel %vm1147_vm4, %v1955_v57, %v1949_v56 }
0x1032   : > { %v1953_v59 = vpop.permute.xlu0 %1952 }
0x1033   : > { %v1957_v60 = vsel %vm1149_vm5, %v1956_v58, %v1953_v59  ;;  %v2476_v59 = vld [vmem:[%s3336_s14 + $0x1] ss:$0 sm:$0xff] }
0x1034   : > { %v1963_v61 = vpack.c.bf16 %v1957_v60, %v1957_v60 }
0x1036   : > { %2692 = vmatmul.mubr.msk.bf16.vlgmr.msra.gmra.mrb[44].mxu0 %vm589_vm0, %v1963_v61  ;;  %v2477_v61 = vld [vmem:[%s3337_s15 + $0x1] ss:$0 sm:$0xff] }
0x1037   : > { %2711 = vmatprep.mubr.msk.bf16.mxu0 %vm2824_vm1, %v2823_v8  ;;  %2704 = vmatpush3.bf16.msra.mxu0 %v2763_v18 }
0x1038   : > { %2705 = vmatprep.subr.bf16.mxu0 %v2823_v8 }
0x103b   : > { %2706 = vmatpush3.bf16.msra.mxu0 %v2764_v24 }
0x103c   : > { %2707 = vmatprep.subr.bf16.mxu0 %v2823_v8 }
0x103f   : > { %2708 = vmatpush3.bf16.msra.mxu0 %v2765_v26 }
0x1040   : > { %2709 = vmatprep.subr.bf16.mxu0 %v2823_v8 }
0x1043   : > { %2710 = vmatpush3.bf16.msra.mxu0 %v2766_v27 }
0x1109   : > { %v2021_v63 = vpop.f32.mrb[44].mxu0 }
0x110a   : > { %v2022_v38 = vadd.f32 %v2442_v62, %v2021_v63  ;;  %v2693_v0 = vpop.f32.mrb[45].mxu0 }
0x110b   : > { %v2024_v1 = vpop.f32.mrb[46].mxu0 }
0x110c   : > { %v2694_v2 = vpop.f32.mrb[47].mxu0  ;;  %v2027_v3 = vadd.f32 %v2022_v38, %v3146_v10 }
0x110e   : > { %v2032_v4 = vsel %vm589_vm0, %v2027_v3, 0.0 }
0x110f   : > { %2033 = vadd.xlane.f32.xlu1 %v2032_v4 }
0x119c   : > { %v2034_v5 = vpop.xlane.xlu1 %2033 }
0x119d   : > { %v2035_v6 = vmul.f32 0.03125, %v2034_v5 }
0x119f   : > { %v2036_v7 = vsub.f32 %v2027_v3, %v2035_v6 }
0x11a1   : > { %v2037_v9 = vmul.f32 %v2036_v7, %v2036_v7 }
0x11a3   : > { %v2038_v11 = vsel %vm589_vm0, %v2037_v9, 0.0 }
0x11a4   : > { %2039 = vadd.xlane.f32.xlu0 %v2038_v11 }
0x1231   : > { %v2040_v10 = vpop.xlane.xlu0 %2039 }
0x1232   : > { %v2041_v14 = vmul.f32 0.03125, %v2040_v10 }
0x1234   : > { %v2042_v15 = vadd.f32 1e-12, %v2041_v14 }
0x1236   : > { %2809 = vrsqrt.f32 %v2042_v15 }
0x1240   : > { %v2810_v16 = vpop.eup %2809 }
0x1241   : > { %v2044_v20 = vmul.f32 %v2810_v16, %v2036_v7 }
0x1243   : > { %v2051_v17 = vmul.f32 %v2448_v19, %v2044_v20 }
0x1245   : > { %v2058_v22 = vadd.f32 %v2449_v21, %v2051_v17 }
0x1247   : > { %v2064_v23 = vpack.c.bf16 %v2058_v22, %v2058_v22 }
0x1249   : > { %2700 = vmatmul.mubr.msk.bf16.vlgmr.msra.gmra.mrb[40].mxu1 %vm589_vm0, %v2064_v23 }
0x124a   : > { %2719 = vmatprep.mubr.msk.bf16.mxu1 %vm2824_vm1, %v2823_v8  ;;  %2716 = vmatpush3.bf16.msra.mxu1 %v2767_v53 }
0x124b   : > { %2717 = vmatprep.subr.bf16.mxu1 %v2823_v8  ;;  %v2478_v8 = vld [vmem:[%s3339_s17] ss:$0 sm:$0xff] }
0x124e   : > { %2718 = vmatpush3.bf16.msra.mxu1 %v2768_v54 }
0x131c   : > { %v2122_v25 = vpop.f32.mrb[40].mxu1 }
0x131d   : > { %v2123_v29 = vadd.f32 %v2455_v28, %v2122_v25  ;;  %v2701_v30 = vpop.f32.mrb[41].mxu1 }
0x131e   : > { %v2125_v31 = vpop.f32.mrb[42].mxu1 }
0x131f   : > { %v2129_v32 = vmul.f32 0.70710677, %v2123_v29  ;;  %v2702_v33 = vpop.f32.mrb[43].mxu1  ;;  %v2128_v35 = vmul.f32 0.5, %v2123_v29 }
0x1321   : > { %2811 = verf.f32 %v2129_v32 }
0x132b   : > { %v2812_v34 = vpop.eup %2811 }
0x132c   : > { %v2131_v36 = vadd.f32 1.0, %v2812_v34 }
0x132e   : > { %v2132_v37 = vmul.f32 %v2131_v36, %v2128_v35 }
0x1330   : > { %v2142_v39 = vpack.c.bf16 %v2132_v37, %v2132_v37 }
0x1332   : > { %2712 = vmatmul.mubr.msk.bf16.vlgmr.msra.gmra.mrb[48].mxu0 %vm1360_vm6, %v2142_v39 }
0x1405   : > { %v2212_v41 = vpop.f32.mrb[48].mxu0 }
0x1406   : > { %v2213_v42 = vadd.f32 %v2468_v40, %v2212_v41  ;;  %v2713_v43 = vpop.f32.mrb[49].mxu0 }
0x1407   : > { %v2215_v44 = vpop.f32.mrb[50].mxu0 }
0x1408   : > { %v2714_v45 = vpop.f32.mrb[51].mxu0  ;;  %v2218_v46 = vadd.f32 %v2213_v42, %v2058_v22 }
0x140a   : > { %v2223_v47 = vsel %vm589_vm0, %v2218_v46, 0.0 }
0x140b   : > { %2224 = vadd.xlane.f32.xlu0 %v2223_v47 }
0x1498   : > { %v2225_v48 = vpop.xlane.xlu0 %2224 }
0x1499   : > { %v2226_v49 = vmul.f32 0.03125, %v2225_v48 }
0x149b   : > { %v2227_v50 = vsub.f32 %v2218_v46, %v2226_v49 }
0x149d   : > { %v2228_v51 = vmul.f32 %v2227_v50, %v2227_v50 }
0x149f   : > { %v2229_v52 = vsel %vm589_vm0, %v2228_v51, 0.0 }
0x14a0   : > { %2230 = vadd.xlane.f32.xlu1 %v2229_v52 }
0x152d   : > { %v2231_v55 = vpop.xlane.xlu1 %2230 }
0x152e   : > { %v2232_v56 = vmul.f32 0.03125, %v2231_v55 }
0x1530   : > { %v2233_v57 = vadd.f32 1e-12, %v2232_v56 }
0x1532   : > { %2813 = vrsqrt.f32 %v2233_v57 }
0x153c   : > { %v2814_v58 = vpop.eup %2813 }
0x153d   : > { %v2235_v60 = vmul.f32 %v2814_v58, %v2227_v50 }
0x153f   : > { %v2242_v62 = vmul.f32 %v2476_v59, %v2235_v60 }
0x1541   : > { %v2249_v63 = vadd.f32 %v2477_v61, %v2242_v62 }
0x1543   : > { %v2254_v38 = vpack.c.bf16 %v2249_v63, %v2249_v63 }
0x1545   : > { %2720 = vmatmul.mubr.msk.bf16.vlgmr.msra.gmra.mrb[44].mxu1 %vm589_vm0, %v2254_v38 }
0x1618   : > { %v2311_v0 = vpop.f32.mrb[44].mxu1 }
0x1619   : > { %v2312_v1 = vadd.f32 %v2478_v8, %v2311_v0  ;;  %v2721_v2 = vpop.f32.mrb[45].mxu1 }
0x161a   : > { %v2314_v3 = vpop.f32.mrb[46].mxu1 }
0x161b   : > { %2317 = vst [vmem:[%s584_s24] sm:$0xff] %v2312_v1  ;;  %v2722_v4 = vpop.f32.mrb[47].mxu1 }
0x161c PF: > { %s28_s27 = sadd.s32 1, %s2821_s27  }
0x161d   : > { %p25_p4 = scmp.ge.s32.totalorder %s28_s27, 4  }
0x161f   :  { %27 = sbr.rel (!%p25_p4) target bundleno = 4 (0x4), region = 137 }

</bundles_post_ra>
